<compile_context>
chip_gen: v5e
topology: v5e:2x2
jax: 0.10.0
libtpu: 0.0.40
codegen_flags: <defaults>
</compile_context>

<pallas_src>
import jax
import jax.numpy as jnp
from jax import lax
from jax.experimental import pallas as pl
from jax.experimental.pallas import tpu as pltpu


def _sample_pdf_kernel(w_ref, tvals_ref, u_ref, out_ref):
    eps = 1e-5
    w = w_ref[...]              # (RB, N)        f32 coarse weights
    tv3 = tvals_ref[...]        # (RB, N+1, 1)   f32 bin edges, bins on sublanes
    u = u_ref[...]              # (RB, U)        f32 stratified samples (lane-padded)

    RB, N = w.shape
    Np1 = tv3.shape[1]

    # --- 1. blur: (max-pool k=2 on edge-padded weights, then avg k=2) + 0.01
    w_left = jnp.concatenate([w[:, :1], w[:, :-1]], axis=-1)    # w[i-1], edge-replicated
    w_right = jnp.concatenate([w[:, 1:], w[:, -1:]], axis=-1)   # w[i+1], edge-replicated
    wb = 0.5 * (jnp.maximum(w_left, w) + jnp.maximum(w, w_right)) + 0.01

    # --- 2. pdf with eps guard for (near-)zero weight rows
    wsum = jnp.sum(wb, axis=-1, keepdims=True)                  # (RB, 1)
    pad = jnp.maximum(0.0, eps - wsum)
    wb = wb + pad / N
    wsum = wsum + pad
    pdf = wb * pl.reciprocal(wsum, approx=False)                # divide on EUP slot

    # --- 3. cdf built directly as (RB, N+1, 1):
    #        cdf[:, j] = min(1, sum_{i<j} pdf[:, i]); cdf[:, 0] == 0, cdf[:, N] == 1 exactly
    i_idx = lax.broadcasted_iota(jnp.int32, (1, Np1, N), 2)
    j_idx = lax.broadcasted_iota(jnp.int32, (1, Np1, N), 1)
    inc = jnp.where(i_idx < j_idx, pdf[:, None, :], 0.0)        # (RB, N+1, N)
    cdf3 = jnp.minimum(1.0, jnp.sum(inc, axis=2, keepdims=True))  # (RB, N+1, 1)
    j_col = lax.broadcasted_iota(jnp.int32, (1, Np1, 1), 1)
    cdf3 = jnp.where(j_col == Np1 - 1, 1.0, cdf3)               # exactly 1 at the last edge

    # --- 4/5. vectorized searchsorted + inverse-CDF interpolation
    mask = u[:, None, :] >= cdf3                                # (RB, N+1, U) bool
    t_first = tv3[:, :1, :]
    t_last = tv3[:, -1:, :]
    bins_g0 = jnp.max(jnp.where(mask, tv3, t_first), axis=1)    # (RB, U)
    bins_g1 = jnp.min(jnp.where(mask, t_last, tv3), axis=1)
    cdf_g0 = jnp.max(jnp.where(mask, cdf3, 0.0), axis=1)        # cdf[:, 0] == 0
    cdf_g1 = jnp.min(jnp.where(mask, 1.0, cdf3), axis=1)        # cdf[:, -1] == 1

    t = (u - cdf_g0) * pl.reciprocal(cdf_g1 - cdf_g0, approx=False)
    t = jnp.where(t != t, 0.0, t)                               # NaN -> 0 (matches torch)
    t = jnp.clip(t, 0.0, 1.0)
    out_ref[...] = bins_g0 + t * (bins_g1 - bins_g0)            # lane-dense (RB, U) store


def _round_up(x, m):
    return (x + m - 1) // m * m


def _stratified_u(key, num_rays, inters_fine):
    """Stratified jittered samples in [0, 1); mirrors the numpy RNG block of the module."""
    s = 1.0 / (inters_fine + 1)
    tiny = float(jnp.finfo(jnp.float32).eps)
    base = jnp.arange(inters_fine + 1, dtype=jnp.float32) * s
    jitter = jax.random.uniform(key, (num_rays, inters_fine + 1), dtype=jnp.float32,
                                minval=0.0, maxval=s - tiny)
    return jnp.minimum(base[None, :] + jitter, 1.0 - tiny)


def sample_pdf(weights, t_inters, inters_fine, key, *, interpret=False):
    """Pallas TPU implementation of Sample_PDF.forward."""
    weights = weights.astype(jnp.float32)
    t_inters = t_inters.astype(jnp.float32)
    R, N = weights.shape
    assert t_inters.shape == (R, N, 2)
    Np1 = N + 1
    F1 = inters_fine + 1

    # ---- layout plumbing in XLA (present lane-dense slabs to the kernel) ----
    t_vals = jnp.concatenate([t_inters[..., 0], t_inters[:, -1:, 1]], axis=-1)  # (R, N+1)
    t_vals3 = t_vals[:, :, None]                                                # (R, N+1, 1)
    u = _stratified_u(key, R, inters_fine)                                      # (R, F1)
    U = _round_up(F1, 128)                       # lane-dense output width
    u_pad = jnp.pad(u, ((0, 0), (0, U - F1)), constant_values=0.5)

    # ---- ray tiling: RB rays per grid step; ray axis is "parallel" ----
    RB = min(_round_up(R, 8), 64)
    R_pad = _round_up(R, RB)
    if R_pad != R:
        pr = R_pad - R
        weights = jnp.pad(weights, ((0, pr), (0, 0)), constant_values=1.0)
        t_vals3 = jnp.pad(t_vals3, ((0, pr), (0, 0), (0, 0)))
        u_pad = jnp.pad(u_pad, ((0, pr), (0, 0)), constant_values=0.5)

    cost = pl.CostEstimate(
        flops=int(R_pad * Np1 * (12 * U + 2 * N) + 16 * R_pad * N),
        transcendentals=int(R_pad * (U + 1)),
        bytes_accessed=int(4 * R_pad * (N + Np1 + 2 * U)),
    )
    samples = pl.pallas_call(
        _sample_pdf_kernel,
        out_shape=jax.ShapeDtypeStruct((R_pad, U), jnp.float32),
        grid=(R_pad // RB,),
        in_specs=[
            pl.BlockSpec((RB, N), lambda i: (i, 0)),
            pl.BlockSpec((RB, Np1, 1), lambda i: (i, 0, 0)),
            pl.BlockSpec((RB, U), lambda i: (i, 0)),
        ],
        out_specs=pl.BlockSpec((RB, U), lambda i: (i, 0)),
        compiler_params=pltpu.CompilerParams(dimension_semantics=("parallel",)),
        cost_estimate=cost,
        interpret=interpret,
    )(weights, t_vals3, u_pad)

    samples = samples[:R, :F1]
    # TODO(synk): torch.sort has no Pallas TPU equivalent; u is already monotone so this is
    # only a numerical safety net, done in XLA on the small (R, inters_fine+1) result.
    t_sorted = jnp.sort(samples, axis=-1)
    return jnp.stack([t_sorted[:, :-1], t_sorted[:, 1:]], axis=-1)   # (R, inters_fine, 2)


def sample_pdf_ref(weights, t_inters, inters_fine, key):
    """Pure-jnp transcription of the PyTorch module (same RNG as the kernel wrapper)."""
    eps = 1e-5
    weights = weights.astype(jnp.float32)
    t_inters = t_inters.astype(jnp.float32)
    R, N = weights.shape
    w_pad = jnp.concatenate([weights[:, :1], weights, weights[:, -1:]], axis=-1)
    w_max = jnp.maximum(w_pad[:, :-1], w_pad[:, 1:])
    w = (w_max[:, :-1] + w_max[:, 1:]) / 2.0 + 0.01
    t_vals = jnp.concatenate([t_inters[..., 0], t_inters[:, -1:, 1]], axis=-1)
    w_sum = jnp.sum(w, axis=-1, keepdims=True)
    padding = jnp.maximum(0.0, eps - w_sum)
    w = w + padding / w.shape[-1]
    w_sum = w_sum + padding
    pdf = w / w_sum
    cdf = jnp.minimum(1.0, jnp.cumsum(pdf[:, :-1], axis=-1))
    cdf = jnp.concatenate(
        [jnp.zeros((R, 1), jnp.float32), cdf, jnp.ones((R, 1), jnp.float32)], axis=-1)
    u = _stratified_u(key, R, inters_fine)
    mask = u[:, None, :] >= cdf[:, :, None]
    bins_g0 = jnp.max(jnp.where(mask, t_vals[:, :, None], t_vals[:, :1, None]), axis=1)
    bins_g1 = jnp.min(jnp.where(mask, t_vals[:, -1:, None], t_vals[:, :, None]), axis=1)
    cdf_g0 = jnp.max(jnp.where(mask, cdf[:, :, None], cdf[:, :1, None]), axis=1)
    cdf_g1 = jnp.min(jnp.where(mask, cdf[:, -1:, None], cdf[:, :, None]), axis=1)
    t = (u - cdf_g0) / (cdf_g1 - cdf_g0)
    t = jnp.where(jnp.isnan(t), 0.0, t)
    t = jnp.clip(t, 0.0, 1.0)
    tv = jnp.sort(bins_g0 + t * (bins_g1 - bins_g0), axis=-1)
    return jnp.stack([tv[:, :-1], tv[:, 1:]], axis=-1)


if __name__ == "__main__":
    key = jax.random.PRNGKey(0)
    k_w, k_t, k_u = jax.random.split(key, 3)

    num_rays, num_coarse, inters_fine = 8, 16, 32   # small shapes implied by the module

    weights = jax.random.uniform(k_w, (num_rays, num_coarse), dtype=jnp.float32)
    # coarse intervals: sorted edges in [2, 6), packed as consecutive (near, far) pairs
    edges = jnp.sort(
        2.0 + 4.0 * jax.random.uniform(k_t, (num_rays, num_coarse + 1), dtype=jnp.float32),
        axis=-1)
    t_inters = jnp.stack([edges[:, :-1], edges[:, 1:]], axis=-1)    # (R, N, 2)

    out = sample_pdf(weights, t_inters, inters_fine, k_u)
    out = jax.block_until_ready(out)
    ref = sample_pdf_ref(weights, t_inters, inters_fine, k_u)

    assert out.shape == (num_rays, inters_fine, 2)
    assert bool(jnp.all(jnp.isfinite(out)))
    assert bool(jnp.all(out[..., 1] >= out[..., 0] - 1e-5))
    # Allow a handful of boundary tie-break differences (u landing exactly on a cdf edge
    # under different f32 reduction orders); everything else must match tightly.
    close = jnp.abs(out - ref) <= (1e-4 + 1e-4 * jnp.abs(ref))
    assert float(jnp.mean(close.astype(jnp.float32))) >= 0.995, "mismatch vs reference"

    print("KERNEL_OK")
</pallas_src>

<mosaic_0001>
module attributes {stable_mosaic.version = 11 : i64} {
  func.func @_sample_pdf_kernel(%arg0: i32, %arg1: memref<8x16xf32, #tpu.memory_space<vmem>>, %arg2: memref<8x17x1xf32, #tpu.memory_space<vmem>>, %arg3: memref<8x128xf32, #tpu.memory_space<vmem>>, %arg4: memref<8x128xf32, #tpu.memory_space<vmem>>) attributes {dimension_semantics = [#tpu.dimension_semantics<parallel>], iteration_bounds = array<i64: 1>, scalar_prefetch = 0 : i64, scratch_operands = 0 : i64, tpu.core_type = #tpu.core_type<tc>, window_params = [{transform_indices = @transform_0, window_bounds = array<i64: 8, 16>}, {transform_indices = @transform_1, window_bounds = array<i64: 8, 17, 1>}, {transform_indices = @transform_2, window_bounds = array<i64: 8, 128>}, {transform_indices = @transform_3, window_bounds = array<i64: 8, 128>}]} {
    %c0 = arith.constant 0 : index
    %c0_0 = arith.constant 0 : index
    %0 = vector.load %arg1[%c0, %c0_0] : memref<8x16xf32, #tpu.memory_space<vmem>>, vector<8x16xf32>
    %c0_1 = arith.constant 0 : index
    %c0_2 = arith.constant 0 : index
    %c0_3 = arith.constant 0 : index
    %1 = vector.load %arg2[%c0_1, %c0_2, %c0_3] : memref<8x17x1xf32, #tpu.memory_space<vmem>>, vector<8x17x1xf32>
    %c0_4 = arith.constant 0 : index
    %c0_5 = arith.constant 0 : index
    %2 = vector.load %arg3[%c0_4, %c0_5] : memref<8x128xf32, #tpu.memory_space<vmem>>, vector<8x128xf32>
    %3 = vector.extract_strided_slice %0 {offsets = [0, 0], sizes = [8, 1], strides = [1, 1]} : vector<8x16xf32> to vector<8x1xf32>
    %4 = vector.extract_strided_slice %0 {offsets = [0, 0], sizes = [8, 15], strides = [1, 1]} : vector<8x16xf32> to vector<8x15xf32>
    %5 = tpu.concatenate %3, %4 in 1 : vector<8x1xf32>, vector<8x15xf32> -> vector<8x16xf32>
    %6 = vector.extract_strided_slice %0 {offsets = [0, 1], sizes = [8, 15], strides = [1, 1]} : vector<8x16xf32> to vector<8x15xf32>
    %7 = vector.extract_strided_slice %0 {offsets = [0, 15], sizes = [8, 1], strides = [1, 1]} : vector<8x16xf32> to vector<8x1xf32>
    %8 = tpu.concatenate %6, %7 in 1 : vector<8x15xf32>, vector<8x1xf32> -> vector<8x16xf32>
    %9 = arith.maximumf %5, %0 : vector<8x16xf32>
    %10 = arith.maximumf %0, %8 : vector<8x16xf32>
    %11 = arith.addf %9, %10 : vector<8x16xf32>
    %cst = arith.constant 5.000000e-01 : f32
    %12 = vector.broadcast %cst : f32 to vector<8x16xf32>
    %13 = arith.mulf %12, %11 : vector<8x16xf32>
    %cst_6 = arith.constant 0.00999999977 : f32
    %14 = vector.broadcast %cst_6 : f32 to vector<8x16xf32>
    %15 = arith.addf %13, %14 : vector<8x16xf32>
    %cst_7 = arith.constant dense<0.000000e+00> : vector<8xf32>
    %16 = vector.multi_reduction <add>, %15, %cst_7 [1] : vector<8x16xf32> to vector<8xf32>
    %17 = vector.shape_cast %16 : vector<8xf32> to vector<8x1xf32>
    %cst_8 = arith.constant 9.99999974E-6 : f32
    %18 = vector.broadcast %cst_8 : f32 to vector<8x1xf32>
    %19 = arith.subf %18, %17 : vector<8x1xf32>
    %cst_9 = arith.constant 0.000000e+00 : f32
    %20 = vector.broadcast %cst_9 : f32 to vector<8x1xf32>
    %21 = arith.maximumf %20, %19 : vector<8x1xf32>
    %cst_10 = arith.constant 1.600000e+01 : f32
    %22 = vector.broadcast %cst_10 : f32 to vector<8x1xf32>
    %23 = arith.divf %21, %22 : vector<8x1xf32>
    %24 = vector.broadcast %23 : vector<8x1xf32> to vector<8x16xf32>
    %25 = arith.addf %15, %24 : vector<8x16xf32>
    %26 = arith.addf %17, %21 : vector<8x1xf32>
    %27 = tpu.reciprocal %26 : vector<8x1xf32> -> vector<8x1xf32>
    %28 = vector.broadcast %27 : vector<8x1xf32> to vector<8x16xf32>
    %29 = arith.mulf %25, %28 : vector<8x16xf32>
    %30 = tpu.iota {dimensions = array<i32: 2>} : vector<1x17x16xi32>
    %31 = tpu.iota {dimensions = array<i32: 1>} : vector<1x17x16xi32>
    %32 = arith.cmpi slt, %30, %31 : vector<1x17x16xi32>
    %33 = vector.shape_cast %29 : vector<8x16xf32> to vector<8x1x16xf32>
    %cst_11 = arith.constant 0.000000e+00 : f32
    %34 = vector.shape_cast %32 : vector<1x17x16xi1> to vector<1x17x16xi1>
    %35 = vector.broadcast %34 : vector<1x17x16xi1> to vector<8x17x16xi1>
    %36 = vector.shape_cast %33 : vector<8x1x16xf32> to vector<8x1x16xf32>
    %37 = vector.broadcast %36 : vector<8x1x16xf32> to vector<8x17x16xf32>
    %38 = vector.broadcast %cst_11 : f32 to vector<8x17x16xf32>
    %39 = arith.select %35, %37, %38 : vector<8x17x16xi1>, vector<8x17x16xf32>
    %cst_12 = arith.constant dense<0.000000e+00> : vector<8x17xf32>
    %40 = vector.multi_reduction <add>, %39, %cst_12 [2] : vector<8x17x16xf32> to vector<8x17xf32>
    %41 = vector.shape_cast %40 : vector<8x17xf32> to vector<8x17x1xf32>
    %cst_13 = arith.constant 1.000000e+00 : f32
    %42 = vector.broadcast %cst_13 : f32 to vector<8x17x1xf32>
    %43 = arith.minimumf %42, %41 : vector<8x17x1xf32>
    %44 = tpu.iota {dimensions = array<i32: 1>} : vector<1x17x1xi32>
    %c16_i32 = arith.constant 16 : i32
    %45 = vector.broadcast %c16_i32 : i32 to vector<1x17x1xi32>
    %46 = arith.cmpi eq, %44, %45 : vector<1x17x1xi32>
    %cst_14 = arith.constant 1.000000e+00 : f32
    %47 = vector.shape_cast %46 : vector<1x17x1xi1> to vector<1x17x1xi1>
    %48 = vector.broadcast %47 : vector<1x17x1xi1> to vector<8x17x1xi1>
    %49 = vector.broadcast %cst_14 : f32 to vector<8x17x1xf32>
    %50 = arith.select %48, %49, %43 : vector<8x17x1xi1>, vector<8x17x1xf32>
    %51 = vector.shape_cast %2 : vector<8x128xf32> to vector<8x1x128xf32>
    %52 = vector.broadcast %51 : vector<8x1x128xf32> to vector<8x17x128xf32>
    %53 = vector.broadcast %50 : vector<8x17x1xf32> to vector<8x17x128xf32>
    %54 = arith.cmpf oge, %52, %53 : vector<8x17x128xf32>
    %55 = vector.extract_strided_slice %1 {offsets = [0, 0, 0], sizes = [8, 1, 1], strides = [1, 1, 1]} : vector<8x17x1xf32> to vector<8x1x1xf32>
    %56 = vector.extract_strided_slice %1 {offsets = [0, 16, 0], sizes = [8, 1, 1], strides = [1, 1, 1]} : vector<8x17x1xf32> to vector<8x1x1xf32>
    %57 = vector.shape_cast %1 : vector<8x17x1xf32> to vector<8x17x1xf32>
    %58 = vector.broadcast %57 : vector<8x17x1xf32> to vector<8x17x128xf32>
    %59 = vector.shape_cast %55 : vector<8x1x1xf32> to vector<8x1x1xf32>
    %60 = vector.broadcast %59 : vector<8x1x1xf32> to vector<8x17x128xf32>
    %61 = arith.select %54, %58, %60 : vector<8x17x128xi1>, vector<8x17x128xf32>
    %cst_15 = arith.constant dense<0xFF800000> : vector<8x128xf32>
    %62 = vector.multi_reduction <maximumf>, %61, %cst_15 [1] : vector<8x17x128xf32> to vector<8x128xf32>
    %63 = vector.shape_cast %56 : vector<8x1x1xf32> to vector<8x1x1xf32>
    %64 = vector.broadcast %63 : vector<8x1x1xf32> to vector<8x17x128xf32>
    %65 = vector.shape_cast %1 : vector<8x17x1xf32> to vector<8x17x1xf32>
    %66 = vector.broadcast %65 : vector<8x17x1xf32> to vector<8x17x128xf32>
    %67 = arith.select %54, %64, %66 : vector<8x17x128xi1>, vector<8x17x128xf32>
    %cst_16 = arith.constant dense<0x7F800000> : vector<8x128xf32>
    %68 = vector.multi_reduction <minimumf>, %67, %cst_16 [1] : vector<8x17x128xf32> to vector<8x128xf32>
    %cst_17 = arith.constant 0.000000e+00 : f32
    %69 = vector.shape_cast %50 : vector<8x17x1xf32> to vector<8x17x1xf32>
    %70 = vector.broadcast %69 : vector<8x17x1xf32> to vector<8x17x128xf32>
    %71 = vector.broadcast %cst_17 : f32 to vector<8x17x128xf32>
    %72 = arith.select %54, %70, %71 : vector<8x17x128xi1>, vector<8x17x128xf32>
    %cst_18 = arith.constant dense<0xFF800000> : vector<8x128xf32>
    %73 = vector.multi_reduction <maximumf>, %72, %cst_18 [1] : vector<8x17x128xf32> to vector<8x128xf32>
    %cst_19 = arith.constant 1.000000e+00 : f32
    %74 = vector.broadcast %cst_19 : f32 to vector<8x17x128xf32>
    %75 = vector.shape_cast %50 : vector<8x17x1xf32> to vector<8x17x1xf32>
    %76 = vector.broadcast %75 : vector<8x17x1xf32> to vector<8x17x128xf32>
    %77 = arith.select %54, %74, %76 : vector<8x17x128xi1>, vector<8x17x128xf32>
    %cst_20 = arith.constant dense<0x7F800000> : vector<8x128xf32>
    %78 = vector.multi_reduction <minimumf>, %77, %cst_20 [1] : vector<8x17x128xf32> to vector<8x128xf32>
    %79 = arith.subf %2, %73 : vector<8x128xf32>
    %80 = arith.subf %78, %73 : vector<8x128xf32>
    %81 = tpu.reciprocal %80 : vector<8x128xf32> -> vector<8x128xf32>
    %82 = arith.mulf %79, %81 : vector<8x128xf32>
    %83 = arith.cmpf one, %82, %82 : vector<8x128xf32>
    %cst_21 = arith.constant 0.000000e+00 : f32
    %84 = vector.broadcast %cst_21 : f32 to vector<8x128xf32>
    %85 = arith.select %83, %84, %82 : vector<8x128xi1>, vector<8x128xf32>
    %cst_22 = arith.constant 0.000000e+00 : f32
    %cst_23 = arith.constant 1.000000e+00 : f32
    %86 = vector.broadcast %cst_22 : f32 to vector<8x128xf32>
    %87 = arith.maximumf %86, %85 : vector<8x128xf32>
    %88 = vector.broadcast %cst_23 : f32 to vector<8x128xf32>
    %89 = arith.minimumf %88, %87 : vector<8x128xf32>
    %90 = arith.subf %68, %62 : vector<8x128xf32>
    %91 = arith.mulf %89, %90 : vector<8x128xf32>
    %92 = arith.addf %62, %91 : vector<8x128xf32>
    %c0_24 = arith.constant 0 : index
    %c0_25 = arith.constant 0 : index
    %93 = vector.load %arg4[%c0_24, %c0_25] : memref<8x128xf32, #tpu.memory_space<vmem>>, vector<8x128xf32>
    tpu.vector_store %arg4[%c0_24, %c0_25], %92 {strides = array<i32>} : memref<8x128xf32, #tpu.memory_space<vmem>>, vector<8x128xf32>,
    return
  }
  func.func @transform_0(%arg0: i32) -> (i32, i32) {
    %c0_i32 = arith.constant 0 : i32
    %c0_i32_0 = arith.constant 0 : i32
    return %arg0, %c0_i32 : i32, i32
  }
  func.func @transform_1(%arg0: i32) -> (i32, i32, i32) {
    %c0_i32 = arith.constant 0 : i32
    %c0_i32_0 = arith.constant 0 : i32
    %c0_i32_1 = arith.constant 0 : i32
    return %arg0, %c0_i32, %c0_i32_0 : i32, i32, i32
  }
  func.func @transform_2(%arg0: i32) -> (i32, i32) {
    %c0_i32 = arith.constant 0 : i32
    %c0_i32_0 = arith.constant 0 : i32
    return %arg0, %c0_i32 : i32, i32
  }
  func.func @transform_3(%arg0: i32) -> (i32, i32) {
    %c0_i32 = arith.constant 0 : i32
    %c0_i32_0 = arith.constant 0 : i32
    return %arg0, %c0_i32 : i32, i32
  }
}

</mosaic_0001>

<bundles_post_ra>
// kernel: tpu_custom_call.1
= control target key start
LH: loop header
LB: loop body
LE: loop exit
PB: predicated region body
PF: predicated region fallthrough
CT: control target
= control target key end

     0   :  { %v1223_v2 = vmov 0   ;;  %s1224_s16 = smov 1   ;;  %s2292_s0 = inlined_call_operand.vmem [shape: f32[8,16], index: 0, kind: input, shape index: {}]   ;;  %s2293_s1 = inlined_call_operand.vmem [shape: f32[8,17,1], index: 1, kind: input, shape index: {}]   ;;  %s2294_s2 = inlined_call_operand.vmem [shape: f32[8,128], index: 2, kind: input, shape index: {}]   ;;  %s2295_s3 = inlined_call_operand.hbm [shape: f32[8,128], index: 3, kind: output, shape index: {}]  }
   0x1   :  { %v15_v0 = vld [vmem:[%s2292_s0] sm:$0xff]  ;;  %v1254_v1 = vld [vmem:[%s2293_s1 + $0x10] sm:$0x1]  ;;  %1175 = vset.pattern.permute.xlu1 %v1223_v2  ;;  %1173 = vset.pattern.permute.xlu2 %v1223_v2 }
   0x2   :  { %42 = vrot.lane.b32.xlu0 %v15_v0, %s1224_s16  ;;  %341 = vperm.xlu1 %1175, %v1254_v1  }
   0x3   :  { %8 = vsyncpa [#allocation3], 0  ;;  %1174 = vset.pattern.permute.xlu0 %v1223_v2  ;;  %v1260_v3 = vld [vmem:[%s2293_s1 + $0x28] sm:$0x1]  ;;  %s1225_s0 = smov 127   ;;  %v23_v4 = vld [vmem:[%s2293_s1 + $0x38] sm:$0xff]  ;;  %v88_v51 = vlaneseq }
   0x4   :  { %v26_v5 = vld [vmem:[%s2293_s1 + $0x50] sm:$0xff]  ;;  %v29_v6 = vld [vmem:[%s2293_s1 + $0x68] sm:$0xff]  ;;  %v32_v7 = vld [vmem:[%s2293_s1 + $0x80] sm:$0xff]  ;;  %vm45_vm0 = vcmask 7168   ;;  %vm50_vm1 = vcmask 121856   ;;  %vm57_vm2 = vcmask 130048  }
   0x5   :  { %v35_v8 = vld [vmem:[%s2293_s1 + $0x98] sm:$0xff]  ;;  %v16_v9 = vld [vmem:[%s2293_s1] sm:$0xff]  ;;  %v22_v13 = vld [vmem:[%s2293_s1 + $0x30] sm:$0xff]  ;;  %v1226_v39 = vmov 16.0   ;;  %v91_v56 = vshrl.u32 %v88_v51, 7  ;;  %v89_v62 = vand.u32 127, %v88_v51 }
   0x6   :  { %331 = vperm.xlu2 %1173, %v16_v9   ;;  %1136 = vpush %v16_v9  ;;  %v19_v10 = vld [vmem:[%s2293_s1 + $0x18] sm:$0xff]  ;;  %v20_v11 = vld [vmem:[%s2293_s1 + $0x20] sm:$0xff]  ;;  %v25_v17 = vld [vmem:[%s2293_s1 + $0x48] sm:$0xff]  ;;  %1176 = vrcp.f32 %v1226_v39  ;;  %vm157_vm11 = vcmask 122880   ;;  %vm498_vm15 = vcmask 1040384   ;;  %s1127_s29 = sshll.u32 %s2295_s3, 4  ;;  %s1128_s29 = int_to_ptr.hbm [resolvable:$true] %s1127_s29 }
   0x7   :  { %1138 = vpush %v19_v10  ;;  %v28_v23 = vld [vmem:[%s2293_s1 + $0x60] sm:$0xff]  ;;  %v31_v25 = vld [vmem:[%s2293_s1 + $0x78] sm:$0xff]  ;;  %v17_v26 = vld [vmem:[%s2293_s1 + $0x8] sm:$0xff]  ;;  %v92_v63 = vadd.s32 8, %v91_v56  ;;  %vm1356_vm9 = vcmp.lt.s32.totalorder %v89_v62, %v91_v56 }
   0x8   :  { %1140 = vpush %v22_v13  ;;  %v34_v27 = vld [vmem:[%s2293_s1 + $0x90] sm:$0xff]  ;;  %v1309_v28 = vld [vmem:[%s2293_s1 + $0x40] sm:$0x1]  ;;  %v1315_v29 = vld [vmem:[%s2293_s1 + $0x58] sm:$0x1] }
   0x9   :  { %1142 = vpush %v25_v17  ;;  %v1321_v30 = vld [vmem:[%s2293_s1 + $0x70] sm:$0x1]  ;;  %v1327_v31 = vld [vmem:[%s2293_s1 + $0x88] sm:$0x1]  ;;  %v1333_v32 = vld [vmem:[%s2293_s1 + $0xa0] sm:$0x1]  ;;  %vm1352_vm8 = vcmp.lt.s32.totalorder %v89_v62, %v92_v63 }
   0xa   :  { %47 = vrot.lane.b32.xlu0 %v15_v0, %s1225_s0  ;;  %356 = vperm.xlu1 %1175, %v1260_v3   ;;  %1144 = vpush %v28_v23 }
   0xb   :  { %1146 = vpush %v31_v25 }
   0xc   :  { %1148 = vpush %v34_v27  ;;  %v1177_v41 = vpop.eup %1176 }
   0xd   :  { %v64_v42 = vmul.f32 16.0, %v1177_v41  ;;  %vm68_vm3 = vweird.f32 %v1177_v41 }
   0xe   :  { %346 = vperm.xlu2 %1173, %v19_v10   ;;  %v1362_v10 = vadd.s32 16, %v91_v56 }
   0xf   :  { %v65_v45 = vsub.f32 1.0, %v64_v42 }
  0x10   :  { %vm1375_vm10 = vcmp.lt.s32.totalorder %v89_v62, %v1362_v10  ;;  %vm250_vm14 = vcmp.eq.s32.totalorder %v1362_v10, 16 }
  0x11   :  { %v66_v48 = vmul.f32 %v1177_v41, %v65_v45 }
  0x12   :  { %366 = vperm.xlu1 %1175, %v23_v4   ;;  %336 = vperm.xlu0 %1174, %v17_v26  }
  0x13   :  { %v67_v49 = vadd.f32 %v1177_v41, %v66_v48 }
  0x15   :  { %v69_v53 = vsel %vm68_vm3, %v1177_v41, %v67_v49 }
  0x16   :  { %351 = vperm.xlu2 %1173, %v20_v11  }
  0x1a   :  { %381 = vperm.xlu1 %1175, %v26_v5   ;;  %371 = vperm.xlu0 %1174, %v1309_v28  }
  0x1e   :  { %361 = vperm.xlu2 %1173, %v22_v13  }
  0x22   :  { %396 = vperm.xlu1 %1175, %v29_v6   ;;  %386 = vperm.xlu0 %1174, %v1315_v29  }
  0x26   :  { %376 = vperm.xlu2 %1173, %v25_v17  }
  0x2a   :  { %411 = vperm.xlu1 %1175, %v32_v7   ;;  %401 = vperm.xlu0 %1174, %v1321_v30  }
  0x2e   :  { %391 = vperm.xlu2 %1173, %v28_v23  }
  0x32   :  { %426 = vperm.xlu1 %1175, %v35_v8   ;;  %416 = vperm.xlu0 %1174, %v1327_v31  }
  0x36   :  { %406 = vperm.xlu2 %1173, %v31_v25  }
  0x37   :  { %s1137_s8 = spop %1136 }
  0x38   :  { %s1501_s9 = spop %1138 }
  0x39   :  { %s1503_s10 = spop %1140 }
  0x3a   :  { %431 = vperm.xlu0 %1174, %v1333_v32   ;;  %s1505_s11 = spop %1142 }
  0x3b   :  { %s1511_s12 = spop %1144 }
  0x3e   :  { %421 = vperm.xlu2 %1173, %v34_v27  }
  0x74   :  { %v43_v12 = vpop.permute.xlu0 %42  ;;  %v1336_v33 = vpop.permute.xlu1 %341 }
  0x75   :  { %v46_v14 = vsel %vm45_vm0, %v15_v0, %v43_v12 }
  0x76   :  { %v52_v18 = vmax.f32 %v46_v14, %v15_v0 }
  0x7c   :  { %v48_v15 = vpop.permute.xlu0 %47  ;;  %v1338_v34 = vpop.permute.xlu1 %356 }
  0x7d   :  { %v51_v16 = vsel %vm50_vm1, %v48_v15, %v15_v0 }
  0x7e   :  { %v53_v19 = vmax.f32 %v15_v0, %v51_v16 }
  0x80   :  { %v54_v20 = vadd.f32 %v53_v19, %v52_v18 }
  0x82   :  { %v55_v21 = vmul.f32 0.5, %v54_v20 }
  0x84   :  { %v56_v22 = vadd.f32 0.01, %v55_v21  ;;  %v1340_v35 = vpop.permute.xlu1 %366 }
  0x86   :  { %v58_v24 = vsel %vm57_vm2, %v56_v22, 0.0 }
  0x87   :  { %59 = vadd.xlane.f32.xlu1 %v58_v24 }
  0x8c   :  { %v1342_v36 = vpop.permute.xlu1 %381 }
  0x94   :  { %v1344_v37 = vpop.permute.xlu1 %396 }
  0x9c   :  { %v1346_v38 = vpop.permute.xlu1 %411 }
  0xa4   :  { %v1348_v40 = vpop.permute.xlu1 %426 }
  0xfa   :  { %v60_v43 = vpop.xlane.xlu1 %59 }
  0xfb   :  { %v61_v44 = vsub.f32 1e-05, %v60_v43 }
  0xfd   :  { %v62_v46 = vmax.f32 %v61_v44, 0.0 }
  0xff   :  { %v72_v47 = vadd.f32 %v62_v46, %v60_v43  ;;  %v70_v57 = vmul.f32 %v69_v53, %v62_v46 }
 0x101   :  { %1178 = vrcp.f32 %v72_v47  ;;  %v84_v55 = vand.u32 2147483648, %v72_v47  ;;  %v82_v59 = vand.u32 2147483647, %v72_v47  ;;  %vm78_vm5 = vweird.f32 %v72_v47 }
 0x102   :  { %v71_v0 = vadd.f32 %v70_v57, %v56_v22 }
 0x103   :  { %v85_v61 = vor.u32 1.1754944e-38, %v84_v55  ;;  %vm83_vm7 = vcmp.eq.f32.partialorder %v82_v59, 8.507059e+37 }
 0x107   :  { %v1179_v50 = vpop.eup %1178 }
 0x108   :  { %v74_v52 = vmul.f32 %v1179_v50, %v72_v47  ;;  %vm79_vm4 = vweird.f32 %v1179_v50 }
 0x109   :  { %vm80_vm6 = vmor %vm78_vm5, %vm79_vm4 }
 0x10a   :  { %v75_v54 = vsub.f32 1.0, %v74_v52 }
 0x10c   :  { %v76_v58 = vmul.f32 %v1179_v50, %v75_v54 }
 0x10e   :  { %v77_v60 = vadd.f32 %v1179_v50, %v76_v58 }
 0x110   :  { %v81_v2 = vsel %vm80_vm6, %v1179_v50, %v77_v60 }
 0x111   :  { %v86_v4 = vsel %vm83_vm7, %v85_v61, %v81_v2 }
 0x112   :  { %v1350_v5 = vmul.f32 %v86_v4, %v71_v0 }
 0x114   :  { %v111_v8 = vperm.slane %v1350_v5, 0  ;;  %v98_v9 = vrot.slane %v1350_v5, 1  ;;  %v102_v14 = vrot.slane %v1350_v5, 5  ;;  %v104_v21 = vrot.slane %v1350_v5, 7 }
 0x115   :  { %v99_v24 = vrot.slane %v1350_v5, 2  ;;  %v103_v26 = vrot.slane %v1350_v5, 6  ;;  %v100_v55 = vrot.slane %v1350_v5, 3  ;;  %v101_v63 = vrot.slane %v1350_v5, 4 }
 0x116   :  { %v128_v11 = vsel %vm1352_vm8, %v111_v8, 0.0  ;;  %v127_v12 = vsel %vm1356_vm9, %v111_v8, 0.0  ;;  %v112_v13 = vperm.slane %v98_v9, 0  ;;  %v1379_v20 = vperm.slane %v102_v14, 0 }
 0x117   :  { %v154_v15 = vsel %vm57_vm2, %v128_v11, 0.0  ;;  %v151_v16 = vsel %vm57_vm2, %v127_v12, 0.0  ;;  %v129_v22 = vsel %vm1375_vm10, %v111_v8, 0.0  ;;  %v1391_v27 = vperm.slane %v104_v21, 0  ;;  %v37_v8 = vld [vmem:[%s2293_s1 + $0xa8] sm:$0xff]  ;;  %v1442_v11 = vpop.permute.xlu2 %331 }
 0x118   :  { %155 = vadd.xlane.f32.xlu2 %v154_v15  ;;  %152 = vadd.xlane.f32.xlu1 %v151_v16  ;;  %v130_v17 = vsel %vm1356_vm9, %v112_v13, 0.0  ;;  %v131_v23 = vsel %vm1352_vm8, %v112_v13, 0.0  ;;  %v143_v25 = vsel %vm1352_vm8, %v1379_v20, 0.0  ;;  %v158_v39 = vsel %vm157_vm11, %v129_v22, 0.0  ;;  %1150 = vpush %v37_v8  ;;  %v337_v22 = vpop.permute.xlu0 %336 }
 0x119   :  { %v161_v18 = vsel %vm57_vm2, %v130_v17, 0.0  ;;  %v164_v41 = vsel %vm57_vm2, %v131_v23, 0.0  ;;  %v113_v42 = vperm.slane %v99_v24, 0  ;;  %v200_v43 = vsel %vm57_vm2, %v143_v25, 0.0  ;;  %1152 = vpush %v1254_v1 }
 0x11a   :  { %162 = vadd.xlane.f32.xlu0 %v161_v18  ;;  %v1396_v44 = vperm.slane %v103_v26, 0  ;;  %v150_v45 = vsel %vm1375_vm10, %v1391_v27, 0.0  ;;  %v132_v47 = vsel %vm1375_vm10, %v112_v13, 0.0  ;;  %v149_v56 = vsel %vm1352_vm8, %v1391_v27, 0.0  ;;  %1154 = vpush %v1260_v3  ;;  %v39_v3 = vld [vmem:[%s2293_s1 + $0xb8] sm:$0x1] }
 0x11b   :  { %v1402_v46 = vsel %vm157_vm11, %v150_v45, 0.0  ;;  %v133_v48 = vsel %vm1356_vm9, %v113_v42, 0.0  ;;  %v167_v50 = vsel %vm157_vm11, %v132_v47, 0.0  ;;  %v134_v53 = vsel %vm1352_vm8, %v113_v42, 0.0  ;;  %1156 = vpush %v1309_v28  ;;  %v1518_v45 = vld [vmem:[%s2294_s2] sm:$0xff] }
 0x11c   :  { %v146_v49 = vsel %vm1352_vm8, %v1396_v44, 0.0  ;;  %v170_v51 = vsel %vm57_vm2, %v133_v48, 0.0  ;;  %v135_v54 = vsel %vm1375_vm10, %v113_v42, 0.0  ;;  %v173_v57 = vsel %vm57_vm2, %v134_v53, 0.0  ;;  %1158 = vpush %v1315_v29  ;;  %v38_v42 = vld [vmem:[%s2293_s1 + $0xb0] sm:$0xff]  ;;  %s1513_s1 = spop %1146 }
 0x11d   :  { %v209_v52 = vsel %vm57_vm2, %v146_v49, 0.0  ;;  %v176_v58 = vsel %vm157_vm11, %v135_v54, 0.0  ;;  %v114_v59 = vperm.slane %v100_v55, 0  ;;  %v218_v60 = vsel %vm57_vm2, %v149_v56, 0.0  ;;  %1160 = vpush %v1321_v30  ;;  %s1520_s15 = spop %1148 }
 0x11e   :  { %v115_v4 = vperm.slane %v101_v63, 0  ;;  %1162 = vpush %v1327_v31  ;;  %v144_v6 = vsel %vm1375_vm10, %v1379_v20, 0.0  ;;  %v145_v17 = vsel %vm1356_vm9, %v1396_v44, 0.0  ;;  %v147_v18 = vsel %vm1375_vm10, %v1396_v44, 0.0 }
 0x11f   :  { %v136_v61 = vsel %vm1356_vm9, %v114_v59, 0.0  ;;  %v137_v62 = vsel %vm1352_vm8, %v114_v59, 0.0  ;;  %v138_v9 = vsel %vm1375_vm10, %v114_v59, 0.0  ;;  %1164 = vpush %v1333_v32  ;;  %v1457_v30 = vpop.permute.xlu2 %346  ;;  %v142_v32 = vsel %vm1356_vm9, %v1379_v20, 0.0 }
 0x120   :  { %159 = vadd.xlane.f32.xlu2 %v158_v39  ;;  %165 = vadd.xlane.f32.xlu1 %v164_v41  ;;  %v179_v0 = vsel %vm57_vm2, %v136_v61, 0.0  ;;  %v182_v2 = vsel %vm57_vm2, %v137_v62, 0.0  ;;  %v139_v5 = vsel %vm1356_vm9, %v115_v4, 0.0  ;;  %v185_v12 = vsel %vm157_vm11, %v138_v9, 0.0  ;;  %1166 = vpush %v39_v3  ;;  %v1486_v19 = vpop.permute.xlu0 %371 }
 0x121   :  { %v188_v1 = vsel %vm57_vm2, %v139_v5, 0.0  ;;  %v140_v28 = vsel %vm1352_vm8, %v115_v4, 0.0  ;;  %v141_v29 = vsel %vm1375_vm10, %v115_v4, 0.0  ;;  %v197_v14 = vsel %vm57_vm2, %v142_v32, 0.0 }
 0x122   :  { %201 = vadd.xlane.f32.xlu0 %v200_v43  ;;  %v191_v31 = vsel %vm57_vm2, %v140_v28, 0.0  ;;  %v194_v13 = vsel %vm157_vm11, %v141_v29, 0.0  ;;  %v203_v15 = vsel %vm157_vm11, %v144_v6, 0.0  ;;  %v206_v21 = vsel %vm57_vm2, %v145_v17, 0.0 }
 0x123   :  { %v212_v20 = vsel %vm157_vm11, %v147_v18, 0.0  ;;  %v148_v24 = vsel %vm1356_vm9, %v1391_v27, 0.0  ;;  %v282_v4 = vrot.slane %v1518_v45, 1  ;;  %v1538_v28 = vstv %s1505_s11 }
 0x124   :  { %v215_v25 = vsel %vm57_vm2, %v148_v24, 0.0  ;;  %v286_v32 = vrot.slane %v1518_v45, 5  ;;  %vm890_vm8 = vcmask 1041409  }
 0x125   :  { %v1540_v29 = vperm.slane %v282_v4, 0 }
 0x127   :  { %v1469_v16 = vpop.permute.xlu2 %351 }
 0x128   :  { %168 = vadd.xlane.f32.xlu2 %v167_v50  ;;  %171 = vadd.xlane.f32.xlu1 %v170_v51  ;;  %v1490_v39 = vpop.permute.xlu0 %386 }
 0x12a   :  { %210 = vadd.xlane.f32.xlu0 %v209_v52  ;;  %v450_v52 = vstv %s1137_s8 }
 0x12f   :  { %v1479_v23 = vpop.permute.xlu2 %361 }
 0x130   :  { %174 = vadd.xlane.f32.xlu2 %v173_v57  ;;  %177 = vadd.xlane.f32.xlu1 %v176_v58  ;;  %v1497_v43 = vpop.permute.xlu0 %401 }
 0x132   :  { %219 = vadd.xlane.f32.xlu0 %v218_v60 }
 0x137   :  { %v1488_v26 = vpop.permute.xlu2 %376 }
 0x138   :  { %180 = vadd.xlane.f32.xlu2 %v179_v0  ;;  %183 = vadd.xlane.f32.xlu1 %v182_v2  ;;  %v1507_v27 = vpop.permute.xlu0 %416 }
 0x13f   :  { %v1492_v41 = vpop.permute.xlu2 %391 }
 0x140   :  { %186 = vadd.xlane.f32.xlu2 %v185_v12  ;;  %189 = vadd.xlane.f32.xlu1 %v188_v1  ;;  %v1525_v49 = vpop.permute.xlu0 %431  ;;  %v1532_v1 = vstv %s1501_s9 }
 0x146   :  { %446 = vperm.xlu0 %1174, %v39_v3   ;;  %v1535_v3 = vstv %s1503_s10 }
 0x147   :  { %v1499_v7 = vpop.permute.xlu2 %406 }
 0x148   :  { %192 = vadd.xlane.f32.xlu2 %v191_v31  ;;  %195 = vadd.xlane.f32.xlu1 %v194_v13 }
 0x149   :  { %s1522_s16 = spop %1150 }
 0x14a   :  { %s1153_s17 = spop %1152 }
 0x14b   :  { %v571_v53 = vstv %s1153_s17  ;;  %s1155_s18 = spop %1154 }
 0x14c   :  { %s1584_s0 = spop %1156 }
 0x14d   :  { %s1591_s19 = spop %1158 }
 0x14e   :  { %s1595_s20 = spop %1160 }
 0x14f   :  { %v1509_v44 = vpop.permute.xlu2 %421  ;;  %s1163_s21 = spop %1162 }
 0x150   :  { %198 = vadd.xlane.f32.xlu2 %v197_v14  ;;  %204 = vadd.xlane.f32.xlu1 %v203_v15  ;;  %s1165_s22 = spop %1164 }
 0x151   :  { %s1167_s23 = spop %1166 }
 0x158   :  { %207 = vadd.xlane.f32.xlu2 %v206_v21  ;;  %213 = vadd.xlane.f32.xlu1 %v212_v20 }
 0x160   :  { %216 = vadd.xlane.f32.xlu2 %v215_v25  ;;  %222 = vadd.xlane.f32.xlu1 %v1402_v46  ;;  %v289_v46 = vperm.slane %v1518_v45, 0 }
 0x178   :  { %436 = vperm.xlu2 %1173, %v37_v8  }
 0x179   :  { %441 = vperm.xlu1 %1175, %v38_v42  }
 0x18b   :  { %v156_v47 = vpop.xlane.xlu2 %155  ;;  %v153_v48 = vpop.xlane.xlu1 %152 }
 0x18c   :  { %v225_v50 = vmin.f32 %v156_v47, 1.0  ;;  %v224_v51 = vmin.f32 %v153_v48, 1.0  ;;  %v1552_v47 = vstv %s1511_s12  ;;  %v1555_v48 = vstv %s1513_s1 }
 0x18d   :  { %v163_v9 = vpop.xlane.xlu0 %162 }
 0x18e   :  { %vm306_vm12 = vcmp.ge.f32.partialorder %v289_v46, %v225_v50  ;;  %vm305_vm13 = vcmp.ge.f32.partialorder %v289_v46, %v224_v51  ;;  %v227_v31 = vmin.f32 %v163_v9, 1.0 }
 0x18f   :  { %v691_v54 = vsel %vm306_vm12, %v225_v50, 0.0  ;;  %v787_v55 = vsel %vm306_vm12, 1.0, %v225_v50  ;;  %v690_v56 = vsel %vm305_vm13, %v224_v51, 0.0  ;;  %v786_v57 = vsel %vm305_vm13, 1.0, %v224_v51 }
 0x190   :  { %v714_v58 = vmax.f32 %v690_v56, %v691_v54  ;;  %v810_v59 = vmin.f32 %v786_v57, %v787_v55  ;;  %v473_v60 = vsel %vm305_vm13, %v1442_v11, %v450_v52  ;;  %v474_v61 = vsel %vm306_vm12, %v337_v22, %v450_v52 }
 0x191   :  { %v497_v62 = vmax.f32 %v473_v60, %v474_v61  ;;  %v594_v63 = vsel %vm305_vm13, %v571_v53, %v1442_v11  ;;  %v595_v0 = vsel %vm306_vm12, %v571_v53, %v337_v22  ;;  %vm308_vm1 = vcmp.ge.f32.partialorder %v1540_v29, %v227_v31 }
 0x192   :  { %v618_v2 = vmin.f32 %v594_v63, %v595_v0  ;;  %v574_v54 = vstv %s1155_s18  ;;  %v1562_v55 = vperm.slane %v286_v32, 0  ;;  %v283_v56 = vrot.slane %v1518_v45, 2 }
 0x193   :  { %v160_v8 = vpop.xlane.xlu2 %159  ;;  %v166_v12 = vpop.xlane.xlu1 %165  ;;  %v693_v63 = vsel %vm308_vm1, %v227_v31, 0.0  ;;  %v789_v0 = vsel %vm308_vm1, 1.0, %v227_v31 }
 0x194   :  { %v226_v5 = vmin.f32 %v160_v8, 1.0  ;;  %v228_v13 = vmin.f32 %v166_v12, 1.0 }
 0x195   :  { %v202_v12 = vpop.xlane.xlu0 %201 }
 0x196   :  { %v259_v11 = vsel %vm250_vm14, 1.0, %v226_v5  ;;  %vm309_vm2 = vcmp.ge.f32.partialorder %v1540_v29, %v228_v13 }
 0x197   :  { %vm307_vm0 = vcmp.ge.f32.partialorder %v289_v46, %v259_v11  ;;  %v694_v32 = vsel %vm309_vm2, %v228_v13, 0.0 }
 0x198   :  { %v475_v6 = vsel %vm307_vm0, %v1336_v33, %v450_v52  ;;  %v596_v14 = vsel %vm307_vm0, %v571_v53, %v1336_v33  ;;  %v692_v15 = vsel %vm307_vm0, %v259_v11, 0.0  ;;  %v788_v17 = vsel %vm307_vm0, 1.0, %v259_v11 }
 0x199   :  { %v499_v18 = vsel %vm498_vm15, %v475_v6, -inf  ;;  %v619_v21 = vsel %vm498_vm15, %v596_v14, inf  ;;  %v715_v20 = vsel %vm498_vm15, %v692_v15, -inf  ;;  %v811_v22 = vsel %vm498_vm15, %v788_v17, inf }
 0x19a   :  { %v500_v24 = vmax.f32 %v497_v62, %v499_v18  ;;  %v620_v25 = vmin.f32 %v618_v2, %v619_v21  ;;  %v716_v42 = vmax.f32 %v714_v58, %v715_v20  ;;  %v812_v46 = vmin.f32 %v810_v59, %v811_v22 }
 0x19b   :  { %v1560_v53 = vstv %s1520_s15  ;;  %v169_v61 = vpop.xlane.xlu2 %168  ;;  %v476_v62 = vsel %vm308_vm1, %v1457_v30, %v1532_v1  ;;  %v477_v2 = vsel %vm309_vm2, %v1469_v16, %v1532_v1  ;;  %v598_v11 = vsel %vm309_vm2, %v574_v54, %v1469_v16 }
 0x19c   :  { %v501_v33 = vrot.slane %v500_v24, 4  ;;  %v621_v50 = vrot.slane %v620_v25, 4  ;;  %v717_v51 = vrot.slane %v716_v42, 4  ;;  %v813_v52 = vrot.slane %v812_v46, 4 }
 0x19d   :  { %v790_v6 = vsel %vm309_vm2, 1.0, %v228_v13  ;;  %v229_v14 = vmin.f32 %v169_v61, 1.0  ;;  %v597_v20 = vsel %vm308_vm1, %v574_v54, %v1457_v30  ;;  %v507_v22 = vmax.f32 %v476_v62, %v477_v2 }
 0x19e   :  { %v502_v57 = vmax.f32 %v500_v24, %v501_v33  ;;  %v622_v58 = vmin.f32 %v620_v25, %v621_v50  ;;  %v718_v59 = vmax.f32 %v716_v42, %v717_v51  ;;  %v814_v60 = vmin.f32 %v812_v46, %v813_v52  ;;  %v172_v33 = vpop.xlane.xlu1 %171 }
 0x19f   :  { %v1589_v24 = vmin.f32 %v202_v12, 1.0  ;;  %v262_v16 = vsel %vm250_vm14, 1.0, %v229_v14  ;;  %v627_v50 = vmin.f32 %v597_v20, %v598_v11  ;;  %v723_v51 = vmax.f32 %v693_v63, %v694_v32 }
 0x1a0   :  { %v503_v4 = vrot.slane %v502_v57, 2  ;;  %v623_v8 = vrot.slane %v622_v58, 2  ;;  %v719_v9 = vrot.slane %v718_v59, 2  ;;  %v815_v5 = vrot.slane %v814_v60, 2 }
 0x1a1   :  { %v819_v52 = vmin.f32 %v789_v0, %v790_v6  ;;  %vm310_vm3 = vcmp.ge.f32.partialorder %v1540_v29, %v262_v16  ;;  %v287_v12 = vrot.slane %v1518_v45, 6  ;;  %vm321_vm4 = vcmp.ge.f32.partialorder %v1562_v55, %v1589_v24 }
 0x1a2   :  { %v504_v15 = vmax.f32 %v502_v57, %v503_v4  ;;  %v624_v17 = vmin.f32 %v622_v58, %v623_v8  ;;  %v720_v18 = vmax.f32 %v718_v59, %v719_v9  ;;  %v816_v21 = vmin.f32 %v814_v60, %v815_v5 }
 0x1a3   :  { %v478_v59 = vsel %vm310_vm3, %v1338_v34, %v1532_v1  ;;  %v599_v60 = vsel %vm310_vm3, %v574_v54, %v1338_v34  ;;  %v695_v61 = vsel %vm310_vm3, %v262_v16, 0.0  ;;  %v791_v62 = vsel %vm310_vm3, 1.0, %v262_v16 }
 0x1a4   :  { %v505_v13 = vrot.slane %v504_v15, 1  ;;  %v625_v25 = vrot.slane %v624_v17, 1  ;;  %v721_v42 = vrot.slane %v720_v18, 1  ;;  %v817_v46 = vrot.slane %v816_v21, 1 }
 0x1a5   :  { %v508_v0 = vsel %vm498_vm15, %v478_v59, -inf  ;;  %v628_v2 = vsel %vm498_vm15, %v599_v60, inf  ;;  %v724_v9 = vsel %vm498_vm15, %v695_v61, -inf  ;;  %v820_v1 = vsel %vm498_vm15, %v791_v62, inf  ;;  %v211_v60 = vpop.xlane.xlu0 %210 }
 0x1a6   :  { %v1598_v30 = vmax.f32 %v504_v15, %v505_v13  ;;  %v1600_v31 = vmin.f32 %v624_v17, %v625_v25  ;;  %v1602_v57 = vmax.f32 %v720_v18, %v721_v42  ;;  %v818_v58 = vmin.f32 %v816_v21, %v817_v46  ;;  %v175_v15 = vpop.xlane.xlu2 %174  ;;  %v178_v46 = vpop.xlane.xlu1 %177 }
 0x1a7   :  { %v509_v4 = vmax.f32 %v507_v22, %v508_v0  ;;  %v629_v8 = vmin.f32 %v627_v50, %v628_v2  ;;  %v1617_v34 = vstv %s1522_s16  ;;  %v1619_v54 = vstv %s1163_s21 }
 0x1a8   :  { %2309 = vst [vmem:[#allocation5_spill] sm:$0xff] %v1598_v30  ;;  %v1608_v63 = vsub.f32 %v818_v58, %v1602_v57  ;;  %v1621_v5 = vperm.slane %v283_v56, 0  ;;  %v725_v6 = vmax.f32 %v723_v51, %v724_v9  ;;  %v821_v14 = vmin.f32 %v819_v52, %v820_v1 }
 0x1a9   :  { %2311 = vst [vmem:[#allocation7_spill] sm:$0xff] %v1617_v34  ;;  %v510_v11 = vrot.slane %v509_v4, 4  ;;  %v630_v32 = vrot.slane %v629_v8, 4  ;;  %v577_v17 = vstv %s1584_s0  ;;  %v230_v18 = vmin.f32 %v172_v33, 1.0 }
 0x1aa   :  { %2310 = vst [vmem:[#allocation6_spill] sm:$0xff] %v1608_v63  ;;  %1180 = vrcp.f32 %v1608_v63  ;;  %v726_v20 = vrot.slane %v725_v6, 4  ;;  %v822_v22 = vrot.slane %v821_v14, 4  ;;  %v1629_v16 = vstv %s1591_s19 }
 0x1ab   :  { %v511_v21 = vmax.f32 %v509_v4, %v510_v11  ;;  %v631_v56 = vmin.f32 %v629_v8, %v630_v32  ;;  %v1631_v13 = vperm.slane %v287_v12, 0  ;;  %v1633_v25 = vstv %s1165_s22 }
 0x1ac   :  { %v231_v42 = vmin.f32 %v175_v15, 1.0  ;;  %v727_v52 = vmax.f32 %v725_v6, %v726_v20  ;;  %v823_v58 = vmin.f32 %v821_v14, %v822_v22  ;;  %v1640_v33 = vsel %vm321_vm4, %v1346_v38, %v1555_v48 }
 0x1ad   :  { %v512_v50 = vrot.slane %v511_v21, 2  ;;  %v632_v51 = vrot.slane %v631_v56, 2  ;;  %v1643_v59 = vstv %s1595_s20  ;;  %vm311_vm5 = vcmp.ge.f32.partialorder %v1621_v5, %v230_v18 }
 0x1ae   :  { %vm312_vm6 = vcmp.ge.f32.partialorder %v1621_v5, %v231_v42  ;;  %v1651_v61 = vsel %vm321_vm4, %v1589_v24, 0.0  ;;  %v1657_v62 = vsel %vm321_vm4, 1.0, %v1589_v24  ;;  %v1664_v0 = vsel %vm321_vm4, %v1619_v54, %v1346_v38 }
 0x1af   :  { %v232_v2 = vmin.f32 %v178_v46, 1.0  ;;  %v728_v8 = vrot.slane %v727_v52, 2  ;;  %v824_v9 = vrot.slane %v823_v58, 2  ;;  %v480_v1 = vsel %vm312_vm6, %v1340_v35, %v1535_v3 }
 0x1b0   :  { %v1666_v4 = vpop.eup %1180  ;;  %v601_v12 = vsel %vm312_vm6, %v577_v17, %v1340_v35  ;;  %v513_v11 = vmax.f32 %v511_v21, %v512_v50  ;;  %v633_v32 = vmin.f32 %v631_v56, %v632_v51  ;;  %v479_v38 = vsel %vm311_vm5, %v1479_v23, %v1535_v3 }
 0x1b1   :  { %2312 = vst [vmem:[#allocation8_spill] sm:$0xff] %v1666_v4  ;;  %v1679_v24 = vmin.f32 %v211_v60, 1.0  ;;  %v729_v6 = vmax.f32 %v727_v52, %v728_v8  ;;  %v825_v14 = vmin.f32 %v823_v58, %v824_v9  ;;  %v600_v15 = vsel %vm311_vm5, %v577_v17, %v1479_v23  ;;  %v181_v8 = vpop.xlane.xlu2 %180 }
 0x1b2   :  { %v696_v20 = vsel %vm311_vm5, %v230_v18, 0.0  ;;  %v915_v35 = vmul.f32 %v1666_v4, %v1608_v63  ;;  %v792_v21 = vsel %vm311_vm5, 1.0, %v230_v18  ;;  %v516_v56 = vmax.f32 %v479_v38, %v480_v1 }
 0x1b3   :  { %v636_v22 = vmin.f32 %v600_v15, %v601_v12  ;;  %v730_v46 = vrot.slane %v729_v6, 1  ;;  %v826_v50 = vrot.slane %v825_v14, 1  ;;  %v697_v51 = vsel %vm312_vm6, %v231_v42, 0.0 }
 0x1b4   :  { %v265_v52 = vsel %vm250_vm14, 1.0, %v232_v2  ;;  %v514_v23 = vrot.slane %v513_v11, 1  ;;  %v634_v58 = vrot.slane %v633_v32, 1  ;;  %v793_v60 = vsel %vm312_vm6, 1.0, %v231_v42 }
 0x1b5   :  { %vm313_vm7 = vcmp.ge.f32.partialorder %v1621_v5, %v265_v52  ;;  %v1697_v9 = vmax.f32 %v729_v6, %v730_v46  ;;  %v827_v18 = vmin.f32 %v825_v14, %v826_v50  ;;  %v732_v12 = vmax.f32 %v696_v20, %v697_v51 }
 0x1b6   :  { %v481_v1 = vsel %vm313_vm7, %v1486_v19, %v1535_v3  ;;  %v602_v2 = vsel %vm313_vm7, %v577_v17, %v1486_v19  ;;  %v698_v15 = vsel %vm313_vm7, %v265_v52, 0.0  ;;  %v828_v14 = vmin.f32 %v792_v21, %v793_v60 }
 0x1b7   :  { %v517_v38 = vsel %vm498_vm15, %v481_v1, -inf  ;;  %v637_v42 = vsel %vm498_vm15, %v602_v2, inf  ;;  %v1711_v6 = vsub.f32 %v827_v18, %v1697_v9  ;;  %v916_v29 = vsub.f32 1.0, %v915_v35 }
 0x1b8   :  { %v518_v46 = vmax.f32 %v516_v56, %v517_v38  ;;  %v638_v50 = vmin.f32 %v636_v22, %v637_v42  ;;  %v925_v3 = vand.u32 2147483648, %v1608_v63  ;;  %v733_v34 = vsel %vm498_vm15, %v698_v15, -inf  ;;  %v184_v22 = vpop.xlane.xlu1 %183 }
 0x1b9   :  { %v794_v19 = vsel %vm313_vm7, 1.0, %v265_v52  ;;  %v1717_v17 = vmax.f32 %v513_v11, %v514_v23  ;;  %v635_v20 = vmin.f32 %v633_v32, %v634_v58  ;;  %1182 = vrcp.f32 %v1711_v6 }
 0x1ba   :  { %v284_v51 = vrot.slane %v1518_v45, 3  ;;  %v519_v18 = vrot.slane %v518_v46, 4  ;;  %v639_v1 = vrot.slane %v638_v50, 4  ;;  %v734_v21 = vmax.f32 %v732_v12, %v733_v34 }
 0x1bb   :  { %2313 = vst [vmem:[#allocation9_spill] sm:$0xff] %v1717_v17  ;;  %v829_v56 = vsel %vm498_vm15, %v794_v19, inf  ;;  %vm324_vm9 = vcmp.ge.f32.partialorder %v1631_v13, %v1679_v24  ;;  %v288_v5 = vrot.slane %v1518_v45, 7  ;;  %v917_v58 = vmul.f32 %v1666_v4, %v916_v29 }
 0x1bc   :  { %v830_v35 = vmin.f32 %v828_v14, %v829_v56  ;;  %v520_v32 = vmax.f32 %v518_v46, %v519_v18  ;;  %v640_v52 = vmin.f32 %v638_v50, %v639_v1  ;;  %v735_v23 = vrot.slane %v734_v21, 4  ;;  %v187_v14 = vpop.xlane.xlu2 %186 }
 0x1bd   :  { %v292_v2 = vperm.slane %v284_v51, 0  ;;  %v233_v34 = vmin.f32 %v181_v8, 1.0  ;;  %v1727_v12 = vor.u32 1.1754944e-38, %v925_v3  ;;  %v1048_v38 = vsub.f32 %v635_v20, %v1717_v17  ;;  %v220_v51 = vpop.xlane.xlu0 %219 }
 0x1be   :  { %v831_v60 = vrot.slane %v830_v35, 4  ;;  %v521_v42 = vrot.slane %v520_v32, 2  ;;  %v736_v15 = vmax.f32 %v734_v21, %v735_v23  ;;  %v1737_v46 = vsel %vm324_vm9, %v1348_v40, %v1560_v53 }
 0x1bf   :  { %2314 = vst [vmem:[#allocation10_spill] sm:$0xff] %v1727_v12  ;;  %v1730_v19 = vpop.eup %1182  ;;  %v641_v29 = vrot.slane %v640_v52, 2  ;;  %v234_v8 = vmin.f32 %v184_v22, 1.0  ;;  %v1743_v3 = vsel %vm324_vm9, %v1679_v24, 0.0  ;;  %v1749_v20 = vsel %vm324_vm9, 1.0, %v1679_v24 }
 0x1c0   :  { %v832_v50 = vmin.f32 %v830_v35, %v831_v60  ;;  %2315 = vst [vmem:[#allocation11_spill] sm:$0xff] %v1749_v20  ;;  %v1756_v18 = vsel %vm324_vm9, %v1633_v25, %v1348_v40  ;;  %v1758_v1 = vperm.slane %v288_v5, 0  ;;  %v1761_v21 = vadd.f32 %v1666_v4, %v917_v58 }
 0x1c1   :  { %v737_v56 = vrot.slane %v736_v15, 2  ;;  %vm314_vm10 = vcmp.ge.f32.partialorder %v292_v2, %v233_v34  ;;  %v929_v22 = vmul.f32 %v1730_v19, %v1711_v6  ;;  %v2317_v23 = vsub.f32 %v1600_v31, %v1598_v30 }
 0x1c2   :  { %2316 = vst [vmem:[#allocation12_spill] sm:$0xff] %v1761_v21  ;;  %v833_v35 = vrot.slane %v832_v50, 2  ;;  %v522_v24 = vmax.f32 %v520_v32, %v521_v42  ;;  %v1771_v40 = vmin.f32 %v220_v51, 1.0  ;;  %v642_v5 = vmin.f32 %v640_v52, %v641_v29 }
 0x1c3   :  { %v1769_v60 = vsel %vm890_vm8, %v1048_v38, %v2317_v23  ;;  %v738_v11 = vmax.f32 %v736_v15, %v737_v56  ;;  %vm315_vm11 = vcmp.ge.f32.partialorder %v292_v2, %v234_v8  ;;  %v939_v58 = vand.u32 2147483648, %v1711_v6  ;;  %v190_v38 = vpop.xlane.xlu1 %189 }
 0x1c4   :  { %2318 = vst [vmem:[#allocation13_spill] sm:$0xff] %v1769_v60  ;;  %v834_v17 = vmin.f32 %v832_v50, %v833_v35  ;;  %v482_v12 = vsel %vm314_vm10, %v1488_v26, %v1538_v28  ;;  %v235_v21 = vmin.f32 %v187_v14, 1.0  ;;  %v285_v63 = vrot.slane %v1518_v45, 4  ;;  %v193_v60 = vpop.xlane.xlu2 %192 }
 0x1c5   :  { %v739_v31 = vrot.slane %v738_v11, 1  ;;  %v603_v32 = vsel %vm314_vm10, %v1629_v16, %v1488_v26  ;;  %v483_v52 = vsel %vm315_vm11, %v1342_v36, %v1538_v28  ;;  %v930_v42 = vsub.f32 1.0, %v929_v22 }
 0x1c6   :  { %v835_v30 = vrot.slane %v834_v17, 1  ;;  %vm327_vm12 = vcmp.ge.f32.partialorder %v1758_v1, %v1771_v40  ;;  %v699_v15 = vsel %vm314_vm10, %v233_v34, 0.0  ;;  %v604_v45 = vsel %vm315_vm11, %v1629_v16, %v1342_v36 }
 0x1c7   :  { %v700_v14 = vsel %vm315_vm11, %v234_v8, 0.0  ;;  %v523_v29 = vrot.slane %v522_v24, 1  ;;  %v643_v50 = vrot.slane %v642_v5, 1  ;;  %v1791_v26 = vmax.f32 %v738_v11, %v739_v31 }
 0x1c8   :  { %v836_v51 = vmin.f32 %v834_v17, %v835_v30  ;;  %v795_v56 = vsel %vm314_vm10, 1.0, %v233_v34  ;;  %v525_v35 = vmax.f32 %v482_v12, %v483_v52  ;;  %v796_v22 = vsel %vm315_vm11, 1.0, %v234_v8 }
 0x1c9   :  { %v268_v23 = vsel %vm250_vm14, 1.0, %v235_v21  ;;  %v645_v36 = vmin.f32 %v603_v32, %v604_v45  ;;  %v741_v20 = vmax.f32 %v699_v15, %v700_v14  ;;  %v837_v12 = vmin.f32 %v795_v56, %v796_v22 }
 0x1ca   :  { %v1798_v4 = vsub.f32 %v836_v51, %v1791_v26  ;;  %vm316_vm13 = vcmp.ge.f32.partialorder %v292_v2, %v268_v23  ;;  %v1805_v8 = vperm.slane %v285_v63, 0  ;;  %v237_v21 = vmin.f32 %v193_v60, 1.0 }
 0x1cb   :  { %v484_v11 = vsel %vm316_vm13, %v1490_v39, %v1538_v28  ;;  %v605_v30 = vsel %vm316_vm13, %v1629_v16, %v1490_v39  ;;  %v701_v17 = vsel %vm316_vm13, %v268_v23, 0.0  ;;  %v797_v34 = vsel %vm316_vm13, 1.0, %v268_v23 }
 0x1cc   :  { %1184 = vrcp.f32 %v1798_v4  ;;  %v526_v31 = vsel %vm498_vm15, %v484_v11, -inf  ;;  %v646_v32 = vsel %vm498_vm15, %v605_v30, inf  ;;  %v742_v2 = vsel %vm498_vm15, %v701_v17, -inf  ;;  %v196_v11 = vpop.xlane.xlu1 %195 }
 0x1cd   :  { %v838_v52 = vsel %vm498_vm15, %v797_v34, inf  ;;  %v527_v28 = vmax.f32 %v525_v35, %v526_v31  ;;  %v647_v15 = vmin.f32 %v645_v36, %v646_v32  ;;  %v743_v45 = vmax.f32 %v741_v20, %v742_v2 }
 0x1ce   :  { %v236_v39 = vmin.f32 %v190_v38, 1.0  ;;  %v931_v16 = vmul.f32 %v1730_v19, %v930_v42  ;;  %v1812_v14 = vmax.f32 %v522_v24, %v523_v29  ;;  %v1814_v51 = vmin.f32 %v642_v5, %v643_v50 }
 0x1cf   :  { %v839_v63 = vmin.f32 %v837_v12, %v838_v52  ;;  %v891_v60 = vsel %vm890_vm8, %v1697_v9, %v1602_v57  ;;  %v528_v56 = vrot.slane %v527_v28, 4  ;;  %v648_v22 = vrot.slane %v647_v15, 4 }
 0x1d0   :  { %v744_v23 = vrot.slane %v743_v45, 4  ;;  %v937_v35 = vand.u32 2147483647, %v1711_v6  ;;  %v1820_v36 = vor.u32 1.1754944e-38, %v939_v58  ;;  %vm318_vm0 = vcmp.ge.f32.partialorder %v1805_v8, %v237_v21 }
 0x1d1   :  { %v840_v20 = vrot.slane %v839_v63, 4  ;;  %v1829_v5 = vsel %vm327_vm12, %v1771_v40, 0.0  ;;  %v1835_v57 = vsel %vm327_vm12, 1.0, %v1771_v40  ;;  %vm317_vm1 = vcmp.ge.f32.partialorder %v1805_v8, %v236_v39 }
 0x1d2   :  { %v1823_v24 = vpop.eup %1184  ;;  %v745_v9 = vmax.f32 %v743_v45, %v744_v23  ;;  %v1839_v58 = vadd.f32 %v1730_v19, %v931_v16  ;;  %vm892_vm2 = vcmask 1042434   ;;  %v238_v29 = vmin.f32 %v196_v11, 1.0 }
 0x1d3   :  { %v841_v42 = vmin.f32 %v839_v63, %v840_v20  ;;  %v529_v50 = vmax.f32 %v527_v28, %v528_v56  ;;  %v649_v30 = vmin.f32 %v647_v15, %v648_v22  ;;  %v486_v34 = vsel %vm318_vm0, %v1344_v37, %v1552_v47  ;;  %v199_v22 = vpop.xlane.xlu2 %198 }
 0x1d4   :  { %v746_v17 = vrot.slane %v745_v9, 2  ;;  %v485_v31 = vsel %vm317_vm1, %v1492_v41, %v1552_v47  ;;  %v606_v32 = vsel %vm317_vm1, %v1643_v59, %v1492_v41  ;;  %v607_v2 = vsel %vm318_vm0, %v1643_v59, %v1344_v37 }
 0x1d5   :  { %v842_v12 = vrot.slane %v841_v42, 2  ;;  %v943_v52 = vmul.f32 %v1823_v24, %v1798_v4  ;;  %v702_v15 = vsel %vm317_vm1, %v236_v39, 0.0  ;;  %v703_v45 = vsel %vm318_vm0, %v237_v21, 0.0 }
 0x1d6   :  { %v747_v28 = vmax.f32 %v745_v9, %v746_v17  ;;  %v798_v63 = vsel %vm317_vm1, 1.0, %v236_v39  ;;  %v534_v41 = vmax.f32 %v485_v31, %v486_v34  ;;  %v271_v56 = vsel %vm250_vm14, 1.0, %v238_v29 }
 0x1d7   :  { %v843_v16 = vmin.f32 %v841_v42, %v842_v12  ;;  %v530_v37 = vrot.slane %v529_v50, 2  ;;  %v650_v23 = vrot.slane %v649_v30, 2  ;;  %v654_v20 = vmin.f32 %v606_v32, %v607_v2 }
 0x1d8   :  { %v748_v11 = vrot.slane %v747_v28, 1  ;;  %v750_v17 = vmax.f32 %v702_v15, %v703_v45  ;;  %v799_v38 = vsel %vm318_vm0, 1.0, %v237_v21  ;;  %vm319_vm3 = vcmp.ge.f32.partialorder %v1805_v8, %v271_v56  ;;  %v205_v45 = vpop.xlane.xlu1 %204 }
 0x1d9   :  { %v844_v9 = vrot.slane %v843_v16, 1  ;;  %v944_v42 = vsub.f32 1.0, %v943_v52  ;;  %v487_v39 = vsel %vm319_vm3, %v1497_v43, %v1552_v47  ;;  %v239_v29 = vmin.f32 %v199_v22, 1.0 }
 0x1da   :  { %v1872_v12 = vmax.f32 %v747_v28, %v748_v11  ;;  %v535_v31 = vsel %vm498_vm15, %v487_v39, -inf  ;;  %v608_v32 = vsel %vm319_vm3, %v1643_v59, %v1497_v43  ;;  %v704_v21 = vsel %vm319_vm3, %v271_v56, 0.0 }
 0x1db   :  { %v845_v34 = vmin.f32 %v843_v16, %v844_v9  ;;  %v846_v2 = vmin.f32 %v798_v63, %v799_v38  ;;  %v536_v52 = vmax.f32 %v534_v41, %v535_v31  ;;  %v655_v28 = vsel %vm498_vm15, %v608_v32, inf }
 0x1dc   :  { %v751_v15 = vsel %vm498_vm15, %v704_v21, -inf  ;;  %v656_v16 = vmin.f32 %v654_v20, %v655_v28  ;;  %v800_v11 = vsel %vm319_vm3, 1.0, %v271_v56  ;;  %v1894_v43 = vsel %vm892_vm2, %v1791_v26, %v891_v60 }
 0x1dd   :  { %v1888_v47 = vsub.f32 %v845_v34, %v1872_v12  ;;  %v752_v22 = vmax.f32 %v750_v17, %v751_v15  ;;  %v537_v59 = vrot.slane %v536_v52, 4  ;;  %v847_v38 = vsel %vm498_vm15, %v800_v11, inf }
 0x1de   :  { %vm320_vm4 = vcmp.ge.f32.partialorder %v1562_v55, %v239_v29  ;;  %v953_v63 = vand.u32 2147483648, %v1798_v4  ;;  %v531_v41 = vmax.f32 %v529_v50, %v530_v37  ;;  %v657_v9 = vrot.slane %v656_v16, 4 }
 0x1df   :  { %v241_v39 = vmin.f32 %v205_v45, 1.0  ;;  %v945_v20 = vmul.f32 %v1823_v24, %v944_v42  ;;  %v651_v17 = vmin.f32 %v649_v30, %v650_v23  ;;  %v753_v34 = vrot.slane %v752_v22, 4 }
 0x1e0   :  { %v848_v8 = vmin.f32 %v846_v2, %v847_v38  ;;  %v951_v56 = vand.u32 2147483647, %v1798_v4  ;;  %1186 = vrcp.f32 %v1888_v47  ;;  %v538_v26 = vmax.f32 %v536_v52, %v537_v59 }
 0x1e1   :  { %v488_v60 = vsel %vm320_vm4, %v1499_v7, %v1555_v48  ;;  %v658_v31 = vmin.f32 %v656_v16, %v657_v9  ;;  %v754_v32 = vmax.f32 %v752_v22, %v753_v34  ;;  %v609_v30 = vsel %vm320_vm4, %v1619_v54, %v1499_v7  ;;  %v208_v22 = vpop.xlane.xlu2 %207 }
 0x1e2   :  { %v849_v50 = vrot.slane %v848_v8, 4  ;;  %v1910_v37 = vor.u32 1.1754944e-38, %v953_v63  ;;  %v532_v23 = vrot.slane %v531_v41, 1  ;;  %v705_v42 = vsel %vm320_vm4, %v239_v29, 0.0 }
 0x1e3   :  { %v274_v21 = vsel %vm250_vm14, 1.0, %v241_v39  ;;  %v1917_v2 = vadd.f32 %v1823_v24, %v945_v20  ;;  %v652_v52 = vrot.slane %v651_v17, 1  ;;  %v755_v28 = vrot.slane %v754_v32, 2 }
 0x1e4   :  { %v850_v15 = vmin.f32 %v848_v8, %v849_v50  ;;  %v539_v45 = vrot.slane %v538_v26, 2  ;;  %v543_v16 = vmax.f32 %v488_v60, %v1640_v33  ;;  %v663_v7 = vmin.f32 %v609_v30, %v1664_v0 }
 0x1e5   :  { %vm322_vm5 = vcmp.ge.f32.partialorder %v1562_v55, %v274_v21  ;;  %v659_v11 = vrot.slane %v658_v31, 2  ;;  %v759_v38 = vmax.f32 %v705_v42, %v1651_v61  ;;  %v801_v63 = vsel %vm320_vm4, 1.0, %v239_v29 }
 0x1e6   :  { %v851_v59 = vrot.slane %v850_v15, 2  ;;  %v1925_v9 = vpop.eup %1186  ;;  %v756_v39 = vmax.f32 %v754_v32, %v755_v28  ;;  %v490_v33 = vsel %vm322_vm5, %v1507_v27, %v1555_v48  ;;  %v611_v0 = vsel %vm322_vm5, %v1619_v54, %v1507_v27 }
 0x1e7   :  { %v707_v20 = vsel %vm322_vm5, %v274_v21, 0.0  ;;  %v1937_v61 = vmax.f32 %v531_v41, %v532_v23  ;;  %v1939_v34 = vmin.f32 %v651_v17, %v652_v52  ;;  %v242_v8 = vmin.f32 %v208_v22, 1.0  ;;  %v214_v23 = vpop.xlane.xlu1 %213 }
 0x1e8   :  { %v852_v29 = vmin.f32 %v850_v15, %v851_v59  ;;  %v855_v60 = vmin.f32 %v801_v63, %v1657_v62  ;;  %v544_v32 = vsel %vm498_vm15, %v490_v33, -inf  ;;  %v664_v48 = vsel %vm498_vm15, %v611_v0, inf }
 0x1e9   :  { %v760_v50 = vsel %vm498_vm15, %v707_v20, -inf  ;;  %v1947_v27 = vmul.f32 %v1925_v9, %v1888_v47  ;;  %v540_v54 = vmax.f32 %v538_v26, %v539_v45  ;;  %v660_v30 = vmin.f32 %v658_v31, %v659_v11 }
 0x1ea   :  { %v545_v41 = vmax.f32 %v543_v16, %v544_v32  ;;  %v757_v17 = vrot.slane %v756_v39, 1  ;;  %v665_v42 = vmin.f32 %v663_v7, %v664_v48  ;;  %v761_v52 = vmax.f32 %v759_v38, %v760_v50 }
 0x1eb   :  { %v803_v62 = vsel %vm322_vm5, 1.0, %v274_v21  ;;  %v853_v28 = vrot.slane %v852_v29, 1  ;;  %vm323_vm6 = vcmp.ge.f32.partialorder %v1631_v13, %v242_v8  ;;  %v1050_v59 = vsub.f32 %v1939_v34, %v1937_v61 }
 0x1ec   :  { %v546_v15 = vrot.slane %v545_v41, 4  ;;  %v856_v22 = vsel %vm498_vm15, %v803_v62, inf  ;;  %v666_v63 = vrot.slane %v665_v42, 4  ;;  %v762_v26 = vrot.slane %v761_v52, 4 }
 0x1ed   :  { %v857_v31 = vmin.f32 %v855_v60, %v856_v22  ;;  %v967_v45 = vand.u32 2147483648, %v1888_v47  ;;  %v541_v16 = vrot.slane %v540_v54, 1  ;;  %v491_v55 = vsel %vm323_vm6, %v1509_v44, %v1560_v53 }
 0x1ee   :  { %v244_v21 = vmin.f32 %v214_v23, 1.0  ;;  %v547_v7 = vmax.f32 %v545_v41, %v546_v15  ;;  %v763_v11 = vmax.f32 %v761_v52, %v762_v26  ;;  %v612_v33 = vsel %vm323_vm6, %v1633_v25, %v1509_v44  ;;  %v2319_v26 = vld [vmem:[#allocation11_spill] sm:$0xff] }
 0x1ef   :  { %v858_v38 = vrot.slane %v857_v31, 4  ;;  %v958_v0 = vsub.f32 1.0, %v1947_v27  ;;  %v661_v20 = vrot.slane %v660_v30, 1  ;;  %v1965_v60 = vmax.f32 %v756_v39, %v757_v17  ;;  %v217_v27 = vpop.xlane.xlu2 %216  ;;  %v223_v22 = vpop.xlane.xlu1 %222 }
 0x1f0   :  { %v854_v32 = vmin.f32 %v852_v29, %v853_v28  ;;  %v667_v48 = vmin.f32 %v665_v42, %v666_v63  ;;  %v764_v50 = vrot.slane %v763_v11, 2  ;;  %v708_v23 = vsel %vm323_vm6, %v242_v8, 0.0 }
 0x1f1   :  { %v859_v62 = vmin.f32 %v857_v31, %v858_v38  ;;  %v552_v41 = vmax.f32 %v491_v55, %v1737_v46  ;;  %v672_v52 = vmin.f32 %v612_v33, %v1756_v18  ;;  %v804_v15 = vsel %vm323_vm6, 1.0, %v242_v8 }
 0x1f2   :  { %v277_v44 = vsel %vm250_vm14, 1.0, %v244_v21  ;;  %v548_v39 = vrot.slane %v547_v7, 2  ;;  %v765_v17 = vmax.f32 %v763_v11, %v764_v50  ;;  %v768_v42 = vmax.f32 %v708_v23, %v1743_v3 }
 0x1f3   :  { %v860_v29 = vrot.slane %v859_v62, 2  ;;  %vm325_vm7 = vcmp.ge.f32.partialorder %v1631_v13, %v277_v44  ;;  %v668_v8 = vrot.slane %v667_v48, 2  ;;  %v864_v31 = vmin.f32 %v804_v15, %v2319_v26 }
 0x1f4   :  { %v493_v28 = vsel %vm325_vm7, %v1525_v49, %v1560_v53  ;;  %v614_v46 = vsel %vm325_vm7, %v1633_v25, %v1525_v49  ;;  %v710_v18 = vsel %vm325_vm7, %v277_v44, 0.0  ;;  %v1982_v55 = vmin.f32 %v217_v27, 1.0 }
 0x1f5   :  { %v861_v63 = vmin.f32 %v859_v62, %v860_v29  ;;  %v766_v21 = vrot.slane %v765_v17, 1  ;;  %v673_v11 = vsel %vm498_vm15, %v614_v46, inf  ;;  %v769_v13 = vsel %vm498_vm15, %v710_v18, -inf }
 0x1f6   :  { %v806_v3 = vsel %vm325_vm7, 1.0, %v277_v44  ;;  %v1986_v38 = vmax.f32 %v540_v54, %v541_v16  ;;  %v1988_v53 = vmin.f32 %v660_v30, %v661_v20  ;;  %v553_v49 = vsel %vm498_vm15, %v493_v28, -inf }
 0x1f7   :  { %v862_v33 = vrot.slane %v861_v63, 1  ;;  %v1992_v25 = vsub.f32 %v854_v32, %v1965_v60  ;;  %v674_v50 = vmin.f32 %v672_v52, %v673_v11  ;;  %v770_v62 = vmax.f32 %v768_v42, %v769_v13 }
 0x1f8   :  { %v865_v23 = vsel %vm498_vm15, %v806_v3, inf  ;;  %v1995_v15 = vmax.f32 %v547_v7, %v548_v39  ;;  %v1997_v27 = vmin.f32 %v667_v48, %v668_v8  ;;  %vm326_vm9 = vcmp.ge.f32.partialorder %v1758_v1, %v1982_v55  ;;  %v2320_v3 = vld [vmem:[#allocation7_spill] sm:$0xff] }
 0x1f9   :  { %v866_v29 = vmin.f32 %v864_v31, %v865_v23  ;;  %v2001_v54 = vmax.f32 %v765_v17, %v766_v21  ;;  %v863_v30 = vmin.f32 %v861_v63, %v862_v33  ;;  %v554_v16 = vmax.f32 %v552_v41, %v553_v49  ;;  %v437_v31 = vpop.permute.xlu2 %436 }
 0x1fa   :  { %v771_v20 = vrot.slane %v770_v62, 4  ;;  %v2004_v32 = vmul.f32 %v1925_v9, %v958_v0  ;;  %v711_v7 = vsel %vm326_vm9, %v1982_v55, 0.0  ;;  %1188 = vrcp.f32 %v1992_v25  ;;  %v442_v0 = vpop.permute.xlu1 %441 }
 0x1fb   :  { %v867_v44 = vrot.slane %v866_v29, 4  ;;  %v675_v48 = vrot.slane %v674_v50, 4  ;;  %v807_v41 = vsel %vm326_vm9, 1.0, %v1982_v55  ;;  %v550_v17 = vrot.slane %v1995_v15, 1 }
 0x1fc   :  { %v772_v39 = vmax.f32 %v770_v62, %v771_v20  ;;  %v670_v42 = vrot.slane %v1997_v27, 1  ;;  %v247_v46 = vmin.f32 %v223_v22, 1.0  ;;  %v2020_v18 = vsub.f32 %v863_v30, %v2001_v54 }
 0x1fd   :  { %v868_v28 = vmin.f32 %v866_v29, %v867_v44  ;;  %v555_v8 = vrot.slane %v554_v16, 4  ;;  %v777_v26 = vmax.f32 %v711_v7, %v1829_v5  ;;  %v873_v11 = vmin.f32 %v807_v41, %v1835_v57  ;;  %v2321_v7 = vld [vmem:[#allocation8_spill] sm:$0xff] }
 0x1fe   :  { %v773_v63 = vrot.slane %v772_v39, 2  ;;  %v280_v13 = vsel %vm250_vm14, 1.0, %v247_v46  ;;  %v495_v22 = vsel %vm327_vm12, %v442_v0, %v2320_v3  ;;  %v676_v33 = vmin.f32 %v674_v50, %v675_v48  ;;  %v447_v48 = vpop.permute.xlu0 %446 }
 0x1ff   :  { %v869_v21 = vrot.slane %v868_v28, 2  ;;  %vm328_vm10 = vcmp.ge.f32.partialorder %v1758_v1, %v280_v13  ;;  %v592_v62 = vstv %s1167_s23  ;;  %v494_v10 = vsel %vm326_vm9, %v437_v31, %v2320_v3 }
 0x200   :  { %v774_v49 = vmax.f32 %v772_v39, %v773_v63  ;;  %v713_v5 = vsel %vm328_vm10, %v280_v13, 0.0  ;;  %v809_v57 = vsel %vm328_vm10, 1.0, %v280_v13  ;;  %v2039_v29 = vpop.eup %1188  ;;  %v561_v44 = vmax.f32 %v494_v10, %v495_v22 }
 0x201   :  { %v870_v23 = vmin.f32 %v868_v28, %v869_v21  ;;  %v778_v50 = vsel %vm498_vm15, %v713_v5, -inf  ;;  %v874_v20 = vsel %vm498_vm15, %v809_v57, inf  ;;  %vm920_vm14 = vweird.f32 %v2321_v7  ;;  %v2322_v57 = vld [vmem:[#allocation6_spill] sm:$0xff] }
 0x202   :  { %v775_v30 = vrot.slane %v774_v49, 1  ;;  %1190 = vrcp.f32 %v2020_v18  ;;  %v779_v41 = vmax.f32 %v777_v26, %v778_v50  ;;  %v875_v28 = vmin.f32 %v873_v11, %v874_v20 }
 0x203   :  { %v871_v39 = vrot.slane %v870_v23, 1  ;;  %v556_v46 = vmax.f32 %v554_v16, %v555_v8  ;;  %v617_v21 = vsel %vm328_vm10, %v592_v62, %v447_v48  ;;  %v496_v5 = vsel %vm328_vm10, %v447_v48, %v2320_v3 }
 0x204   :  { %v2045_v63 = vmax.f32 %v774_v49, %v775_v30  ;;  %vm919_vm11 = vweird.f32 %v2322_v57  ;;  %vm934_vm13 = vweird.f32 %v1730_v19  ;;  %v780_v10 = vrot.slane %v779_v41, 4 }
 0x205   :  { %v872_v22 = vmin.f32 %v870_v23, %v871_v39  ;;  %v876_v52 = vrot.slane %v875_v28, 4  ;;  %v562_v26 = vsel %vm498_vm15, %v496_v5, -inf  ;;  %vm948_vm0 = vweird.f32 %v1823_v24 }
 0x206   :  { %v677_v16 = vrot.slane %v676_v33, 2  ;;  %v615_v8 = vsel %vm326_vm9, %v592_v62, %v437_v31  ;;  %v563_v11 = vmax.f32 %v561_v44, %v562_v26  ;;  %v616_v13 = vsel %vm327_vm12, %v592_v62, %v442_v0  ;;  %vm2104_vm9 = vmor %vm919_vm11, %vm920_vm14 }
 0x207   :  { %vm933_vm1 = vweird.f32 %v1711_v6  ;;  %v2064_v3 = vsub.f32 %v872_v22, %v2045_v63  ;;  %v781_v49 = vmax.f32 %v779_v41, %v780_v10  ;;  %v877_v23 = vmin.f32 %v875_v28, %v876_v52 }
 0x208   :  { %v681_v30 = vmin.f32 %v615_v8, %v616_v13  ;;  %vm947_vm3 = vweird.f32 %v1798_v4  ;;  %v557_v50 = vrot.slane %v556_v46, 2  ;;  %v682_v20 = vsel %vm498_vm15, %v617_v21, inf  ;;  %v2068_v31 = vpop.eup %1190  ;;  %vm2121_vm14 = vmor %vm933_vm1, %vm934_vm13 }
 0x209   :  { %v564_v55 = vrot.slane %v563_v11, 4  ;;  %vm894_vm4 = vcmask 1043459   ;;  %v2323_v1 = vand.u32 2147483647, %v2322_v57  ;;  %1192 = vrcp.f32 %v2064_v3  ;;  %vm2138_vm11 = vmor %vm947_vm3, %vm948_vm0 }
 0x20a   :  { %v782_v0 = vrot.slane %v781_v49, 2  ;;  %v878_v52 = vrot.slane %v877_v23, 2  ;;  %v683_v62 = vmin.f32 %v681_v30, %v682_v20  ;;  %v971_v44 = vmul.f32 %v2039_v29, %v1992_v25  ;;  %v2330_v30 = vld [vmem:[#allocation12_spill] sm:$0xff] }
 0x20b   :  { %vm2072_vm12 = vcmp.eq.f32.partialorder %v2323_v1, 8.507059e+37  ;;  %v2082_v48 = vmin.f32 %v1997_v27, %v670_v42  ;;  %v2084_v39 = vmin.f32 %v676_v33, %v677_v16  ;;  %v565_v41 = vmax.f32 %v563_v11, %v564_v55 }
 0x20c   :  { %v783_v28 = vmax.f32 %v781_v49, %v782_v0  ;;  %v879_v21 = vmin.f32 %v877_v23, %v878_v52  ;;  %v684_v5 = vrot.slane %v683_v62, 4  ;;  %vm896_vm15 = vcmask 1044484  }
 0x20d   :  { %vm2088_vm5 = vcmp.eq.f32.partialorder %v937_v35, 8.507059e+37  ;;  %v985_v10 = vmul.f32 %v2068_v31, %v2020_v18  ;;  %v2094_v26 = vmax.f32 %v556_v46, %v557_v50  ;;  %v566_v27 = vrot.slane %v565_v41, 2 }
 0x20e   :  { %v895_v42 = vsel %vm894_vm4, %v1872_v12, %v1894_v43  ;;  %vm961_vm6 = vweird.f32 %v1888_v47  ;;  %v784_v33 = vrot.slane %v783_v28, 1  ;;  %v880_v16 = vrot.slane %v879_v21, 1 }
 0x20f   :  { %v685_v8 = vmin.f32 %v683_v62, %v684_v5  ;;  %vm898_vm7 = vcmask 1045509   ;;  %v972_v46 = vsub.f32 1.0, %v971_v44  ;;  %v679_v11 = vrot.slane %v2084_v39, 1  ;;  %v2111_v43 = vpop.eup %1192 }
 0x210   :  { %v897_v12 = vsel %vm896_vm15, %v1965_v60, %v895_v42  ;;  %vm900_vm10 = vcmask 1046534   ;;  %v785_v13 = vmax.f32 %v783_v28, %v784_v33  ;;  %v881_v49 = vmin.f32 %v879_v21, %v880_v16 }
 0x211   :  { %v686_v23 = vrot.slane %v685_v8, 2  ;;  %v922_v57 = vsel %vm2104_vm9, %v2321_v7, %v2330_v30  ;;  %v986_v60 = vsub.f32 1.0, %v985_v10  ;;  %v2125_v20 = vmax.f32 %v565_v41, %v566_v27 }
 0x212   :  { %v2130_v55 = vmax.f32 %v1995_v15, %v550_v17  ;;  %v899_v1 = vsel %vm898_vm7, %v2001_v54, %v897_v12  ;;  %v2142_v7 = vsub.f32 %v881_v49, %v785_v13  ;;  %v559_v0 = vrot.slane %v2094_v26, 1  ;;  %v2335_v54 = vld [vmem:[#allocation10_spill] sm:$0xff] }
 0x213   :  { %v901_v52 = vsel %vm900_vm10, %v2045_v63, %v899_v1  ;;  %vm902_vm13 = vcmask 1047559   ;;  %v999_v15 = vmul.f32 %v2111_v43, %v2064_v3  ;;  %v927_v17 = vsel %vm2072_vm12, %v2335_v54, %v922_v57 }
 0x214   :  { %v936_v62 = vsel %vm2121_vm14, %v1730_v19, %v1839_v58  ;;  %v950_v44 = vsel %vm2138_vm11, %v1823_v24, %v1917_v2  ;;  %1194 = vrcp.f32 %v2142_v7  ;;  %v2161_v63 = vmin.f32 %v685_v8, %v686_v23 }
 0x215   :  { %v960_v41 = vadd.f32 %v1925_v9, %v2004_v32  ;;  %vm962_vm0 = vweird.f32 %v1925_v9  ;;  %v568_v40 = vrot.slane %v2125_v20, 1  ;;  %v965_v28 = vand.u32 2147483647, %v1888_v47 }
 0x216   :  { %v973_v19 = vmul.f32 %v2039_v29, %v972_v46  ;;  %vm976_vm1 = vweird.f32 %v2039_v29  ;;  %v2171_v58 = vsel %vm902_vm13, %v785_v13, %v901_v52  ;;  %v941_v24 = vsel %vm2088_vm5, %v1820_v36, %v936_v62  ;;  %vm2181_vm12 = vmor %vm961_vm6, %vm962_vm0  ;;  %v2344_v62 = vld [vmem:[#allocation13_spill] sm:$0xff] }
 0x217   :  { %vm952_vm3 = vcmp.eq.f32.partialorder %v951_v56, 8.507059e+37  ;;  %v981_v2 = vand.u32 2147483648, %v1992_v25  ;;  %vm975_vm9 = vweird.f32 %v1992_v25  ;;  %v979_v5 = vand.u32 2147483647, %v1992_v25 }
 0x218   :  { %v974_v21 = vadd.f32 %v2039_v29, %v973_v19  ;;  %v987_v22 = vmul.f32 %v2068_v31, %v986_v60  ;;  %v688_v36 = vrot.slane %v2161_v63, 1  ;;  %v955_v4 = vsel %vm952_vm3, %v1910_v37, %v950_v44  ;;  %vm977_vm5 = vmor %vm975_vm9, %vm976_vm1 }
 0x219   :  { %v964_v56 = vsel %vm2181_vm12, %v1925_v9, %v960_v41  ;;  %v968_v10 = vor.u32 1.1754944e-38, %v967_v45  ;;  %vm966_vm6 = vcmp.eq.f32.partialorder %v965_v28, 8.507059e+37  ;;  %v993_v42 = vand.u32 2147483647, %v2020_v18 }
 0x21a   :  { %v978_v27 = vsel %vm977_vm5, %v2039_v29, %v974_v21  ;;  %v1000_v25 = vsub.f32 1.0, %v999_v15  ;;  %v1195_v33 = vpop.eup %1194  ;;  %v982_v16 = vor.u32 1.1754944e-38, %v981_v2  ;;  %v988_v8 = vadd.f32 %v2068_v31, %v987_v22 }
 0x21b   :  { %vm990_vm14 = vweird.f32 %v2068_v31  ;;  %v995_v37 = vand.u32 2147483648, %v2020_v18  ;;  %v969_v35 = vsel %vm966_vm6, %v968_v10, %v964_v56  ;;  %vm980_vm11 = vcmp.eq.f32.partialorder %v979_v5, 8.507059e+37 }
 0x21c   :  { %v1001_v47 = vmul.f32 %v2111_v43, %v1000_v25  ;;  %vm1004_vm0 = vweird.f32 %v2111_v43  ;;  %v983_v9 = vsel %vm980_vm11, %v982_v16, %v978_v27  ;;  %vm989_vm1 = vweird.f32 %v2020_v18 }
 0x21d   :  { %v1009_v45 = vand.u32 2147483648, %v2064_v3  ;;  %v1013_v29 = vmul.f32 %v1195_v33, %v2142_v7  ;;  %vm2206_vm3 = vmor %vm989_vm1, %vm990_vm14  ;;  %vm2210_vm12 = vcmp.eq.f32.partialorder %v993_v42, 8.507059e+37  ;;  %vm1003_vm9 = vweird.f32 %v2064_v3 }
 0x21e   :  { %v1002_v13 = vadd.f32 %v2111_v43, %v1001_v47  ;;  %v1007_v49 = vand.u32 2147483647, %v2064_v3  ;;  %v992_v18 = vsel %vm2206_vm3, %v2068_v31, %v988_v8  ;;  %v996_v23 = vor.u32 1.1754944e-38, %v995_v37  ;;  %vm2220_vm5 = vmor %vm1003_vm9, %vm1004_vm0 }
 0x21f   :  { %v1014_v57 = vsub.f32 1.0, %v1013_v29  ;;  %vm1017_vm6 = vweird.f32 %v2142_v7  ;;  %vm1018_vm14 = vweird.f32 %v1195_v33  ;;  %v1021_v60 = vand.u32 2147483647, %v2142_v7 }
 0x220   :  { %v1006_v50 = vsel %vm2220_vm5, %v2111_v43, %v1002_v13  ;;  %v1023_v3 = vand.u32 2147483648, %v2142_v7  ;;  %v1010_v1 = vor.u32 1.1754944e-38, %v1009_v45  ;;  %v1034_v31 = vsel %vm890_vm8, %v941_v24, %v927_v17  ;;  %vm1019_vm0 = vmor %vm1017_vm6, %vm1018_vm14  ;;  %v2348_v45 = vld [vmem:[#allocation9_spill] sm:$0xff] }
 0x221   :  { %v1015_v6 = vmul.f32 %v1195_v33, %v1014_v57  ;;  %v1052_v52 = vsub.f32 %v2082_v48, %v2130_v55  ;;  %v997_v15 = vsel %vm2210_vm12, %v996_v23, %v992_v18  ;;  %vm1008_vm11 = vcmp.eq.f32.partialorder %v1007_v49, 8.507059e+37 }
 0x222   :  { %v1035_v54 = vsel %vm892_vm2, %v955_v4, %v1034_v31  ;;  %v2345_v43 = vsub.f32 %v1814_v51, %v1812_v14  ;;  %v1011_v41 = vsel %vm1008_vm11, %v1010_v1, %v1006_v50  ;;  %v680_v17 = vmin.f32 %v2084_v39, %v679_v11  ;;  %v1196_v11 = vld [vmem:[%s2294_s2] sm:$0xff]  ;;  %s1227_s2 = smov [#allocation2]  }
 0x223   :  { %v1016_v28 = vadd.f32 %v1195_v33, %v1015_v6  ;;  %v1036_v19 = vsel %vm894_vm4, %v969_v35, %v1035_v54  ;;  %v1024_v51 = vor.u32 1.1754944e-38, %v1023_v3  ;;  %v2346_v2 = vsub.f32 %v1988_v53, %v1986_v38  ;;  %s1125_s26 = sshll.u32 %s1227_s2, 4  ;;  %s1126_s26 = int_to_ptr.vmem [resolvable:$true] %s1125_s26 }
 0x224   :  { %v1064_v44 = vsel %vm892_vm2, %v2345_v43, %v2344_v62  ;;  %v1037_v24 = vsel %vm896_vm15, %v983_v9, %v1036_v19  ;;  %vm1022_vm1 = vcmp.eq.f32.partialorder %v1021_v60, 8.507059e+37  ;;  %v560_v39 = vmax.f32 %v2094_v26, %v559_v0 }
 0x225   :  { %v1065_v48 = vsel %vm894_vm4, %v1050_v59, %v1064_v44  ;;  %v1020_v21 = vsel %vm1019_vm0, %v1195_v33, %v1016_v28  ;;  %v1038_v34 = vsel %vm898_vm7, %v997_v15, %v1037_v24  ;;  %v905_v7 = vsub.f32 %v1196_v11, %v2171_v58 }
 0x226   :  { %v1066_v32 = vsel %vm896_vm15, %v2346_v2, %v1065_v48  ;;  %v1025_v5 = vsel %vm1022_vm1, %v1024_v51, %v1020_v21  ;;  %v1039_v53 = vsel %vm900_vm10, %v1011_v41, %v1038_v34  ;;  %v689_v22 = vmin.f32 %v2161_v63, %v688_v36 }
 0x227   :  { %v1067_v59 = vsel %vm898_vm7, %v1052_v52, %v1066_v32  ;;  %v569_v4 = vmax.f32 %v2125_v20, %v568_v40  ;;  %v1040_v56 = vsel %vm902_vm13, %v1025_v5, %v1039_v53  ;;  %v1053_v0 = vsub.f32 %v680_v17, %v560_v39  ;;  %v2347_v40 = vld [vmem:[#allocation5_spill] sm:$0xff] }
 0x228   :  { %v1042_v26 = vmul.f32 %v1040_v56, %v905_v7 }
 0x229   :  { %v1054_v27 = vsub.f32 %v689_v22, %v569_v4  ;;  %v1068_v25 = vsel %vm900_vm10, %v1053_v0, %v1067_v59 }
 0x22a   :  { %vm1043_vm3 = vcmp.ne.f32.partialorder %v1042_v26, %v1042_v26 }
 0x22b   :  { %v1044_v10 = vsel %vm1043_vm3, 0.0, %v1042_v26  ;;  %v1069_v33 = vsel %vm902_vm13, %v1054_v27, %v1068_v25 }
 0x22c   :  { %v1045_v42 = vmax.f32 %v1044_v10, 0.0 }
 0x22e   :  { %v1046_v58 = vmin.f32 %v1045_v42, 1.0 }
 0x230   :  { %v1071_v16 = vmul.f32 %v1069_v33, %v1046_v58 }
 0x232   :  { %v1073_v8 = vrot.slane %v1071_v16, 1  ;;  %v1074_v63 = vrot.slane %v1071_v16, 2  ;;  %v1075_v36 = vrot.slane %v1071_v16, 3  ;;  %v1076_v37 = vrot.slane %v1071_v16, 4 }
 0x233   :  { %v1077_v35 = vrot.slane %v1071_v16, 5  ;;  %v1078_v20 = vrot.slane %v1071_v16, 6  ;;  %v1088_v47 = vadd.f32 %v1071_v16, %v2347_v40  ;;  %v1079_v9 = vrot.slane %v1071_v16, 7 }
 0x234   :  { %v1089_v29 = vadd.f32 %v1073_v8, %v2348_v45  ;;  %v1090_v46 = vadd.f32 %v1074_v63, %v1812_v14  ;;  %v1091_v12 = vadd.f32 %v1075_v36, %v1937_v61  ;;  %v1092_v13 = vadd.f32 %v1076_v37, %v1986_v38 }
 0x235   :  { %v1093_v49 = vadd.f32 %v1077_v35, %v2130_v55  ;;  %v1094_v30 = vadd.f32 %v1078_v20, %v560_v39  ;;  %v1095_v57 = vadd.f32 %v1079_v9, %v569_v4 }
 0x236   :  { %v1104_v18 = vrot.slane %v1089_v29, 7  ;;  %v1106_v23 = vrot.slane %v1090_v46, 6  ;;  %v1108_v60 = vrot.slane %v1091_v12, 5  ;;  %v1110_v1 = vrot.slane %v1092_v13, 4 }
 0x237   :  { %v1112_v31 = vrot.slane %v1093_v49, 3  ;;  %v1114_v61 = vrot.slane %v1094_v30, 2  ;;  %v1116_v55 = vrot.slane %v1095_v57, 1 }
 0x238   :  { %v1105_v50 = vsel %vm890_vm8, %v1104_v18, %v1088_v47 }
 0x239   :  { %v1107_v3 = vsel %vm892_vm2, %v1106_v23, %v1105_v50 }
 0x23a   :  { %v1109_v6 = vsel %vm894_vm4, %v1108_v60, %v1107_v3 }
 0x23b   :  { %v1111_v14 = vsel %vm896_vm15, %v1110_v1, %v1109_v6 }
 0x23c   :  { %v1113_v38 = vsel %vm898_vm7, %v1112_v31, %v1111_v14 }
 0x23d   :  { %v1115_v52 = vsel %vm900_vm10, %v1114_v61, %v1113_v38 }
 0x23e   :  { %v1117_v15 = vsel %vm902_vm13, %v1116_v55, %v1115_v52 }
 0x23f   :  { %1119 = vst [vmem:[#allocation2] sm:$0xff] %v1117_v15 }
 0x240   :  { %1130 = dma.vmem_to_hbm [thread:$0]  %s1126_s26, 128, %s1128_s29, [#allocation3]  }
 0x241   :  { %1221 = dma.done.wait [#allocation3], 128  }
 0x242   :  { %1222 = vsyncadd [#allocation3], 4294967168 }
 0x243   :  { %1135 = vsyncpa [#allocation3], 1 }

</bundles_post_ra>
